<compile_context>
chip_gen: v7x
topology: tpu7x:2x2x1
jax: 0.10.0
libtpu: 0.0.40
codegen_flags: <defaults>
</compile_context>

<pallas_src>
import functools
import math

import jax
import jax.numpy as jnp
from jax.experimental import pallas as pl
from jax.experimental.pallas import tpu as pltpu


# ---------------------------------------------------------------------------
# Fused kernel: pos-encoding + nlayers encoder layers (grid over layers)
# ---------------------------------------------------------------------------
def _fused_encoder_kernel(x_ref, pe_ref, wqkv_ref, bqkv_ref, wo_ref, bo_ref,
                          ln1w_ref, ln1b_ref, w1_ref, b1_ref, w2_ref, b2_ref,
                          ln2w_ref, ln2b_ref, out_ref, x_scr, attn_scr,
                          *, batch, seq_len, nheads, head_dim):
    E = nheads * head_dim

    # Layer 0: load the activation into the resident VMEM buffer and add the
    # positional encoding (pe has been pre-broadcast to (B*S, E) in the wrapper).
    @pl.when(pl.program_id(0) == 0)
    def _():
        x_scr[...] = x_ref[...] + pe_ref[...]
        # TODO(synk): PositionalEncoding.dropout omitted (eval mode => identity).

    x = x_scr[...]                                   # (B*S, E) resident activation

    def layer_norm(t, w, b):
        mu = jnp.mean(t, axis=-1, keepdims=True)
        c = t - mu
        var = jnp.mean(c * c, axis=-1, keepdims=True)
        return c * jax.lax.rsqrt(var + 1e-5) * w + b

    # ---- fused QKV projection: one (B*S, E) @ (E, 3E) MXU matmul ----
    qkv = jnp.dot(x, wqkv_ref[0], preferred_element_type=jnp.float32) + bqkv_ref[0]
    q = qkv[:, :E]
    k = qkv[:, E:2 * E]
    v = qkv[:, 2 * E:]

    # ---- per-(batch, head) scaled dot-product attention (inherently tiny S x S) ----
    scale = 1.0 / math.sqrt(head_dim)
    for b in range(batch):
        r = b * seq_len
        for h in range(nheads):
            c = h * head_dim
            qh = q[r:r + seq_len, c:c + head_dim]          # (S, hd)
            kh = k[r:r + seq_len, c:c + head_dim]          # (S, hd)
            vh = v[r:r + seq_len, c:c + head_dim]          # (S, hd)
            s = jax.lax.dot_general(                       # qh @ kh^T  -> (S, S)
                qh, kh, dimension_numbers=(((1,), (1,)), ((), ())),
                preferred_element_type=jnp.float32) * scale
            s = s - jnp.max(s, axis=-1, keepdims=True)
            p = jnp.exp(s)
            p = p / jnp.sum(p, axis=-1, keepdims=True)     # exact divide (5e-3 parity)
            attn_scr[r:r + seq_len, c:c + head_dim] = jnp.dot(
                p, vh, preferred_element_type=jnp.float32)
    # TODO(synk): attention / residual / FFN dropout omitted (eval mode => identity).

    # ---- fused out-projection over all heads and the whole batch (K = E) ----
    o = jnp.dot(attn_scr[...], wo_ref[0], preferred_element_type=jnp.float32) + bo_ref[0]
    y = layer_norm(x + o, ln1w_ref[0], ln1b_ref[0])

    # ---- feed-forward (whole batch folded into rows) ----
    f = jnp.maximum(jnp.dot(y, w1_ref[0], preferred_element_type=jnp.float32)
                    + b1_ref[0], 0.0)
    f = jnp.dot(f, w2_ref[0], preferred_element_type=jnp.float32) + b2_ref[0]
    new_x = layer_norm(y + f, ln2w_ref[0], ln2b_ref[0])

    x_scr[...] = new_x                                # residual stream stays in VMEM
    out_ref[...] = new_x.astype(out_ref.dtype)        # flushed to HBM once, at grid end


# ---------------------------------------------------------------------------
# Wrapper
# ---------------------------------------------------------------------------
def transformer_encoder_forward(seq, pe, params, *, nheads):
    """seq: (S, B, E) float32; pe: (max_len, E); params: stacked Pallas-layout dict."""
    S, B, E = seq.shape
    L = params["w_qkv"].shape[0]
    H = params["w1"].shape[2]
    hd = E // nheads
    M = B * S

    # One-time, tiny layout plumbing (single kernel call => no per-layer round trips):
    x = jnp.transpose(seq, (1, 0, 2)).reshape(M, E)   # row = b*S + s
    pe_slab = jnp.tile(pe[:S], (B, 1))                # row b*S + s  ->  pe[s]

    kern = functools.partial(_fused_encoder_kernel, batch=B, seq_len=S,
                             nheads=nheads, head_dim=hd)

    in_specs = [
        pl.BlockSpec((M, E), lambda l: (0, 0)),              # x (loaded once)
        pl.BlockSpec((M, E), lambda l: (0, 0)),              # positional encoding slab
        pl.BlockSpec((1, E, 3 * E), lambda l: (l, 0, 0)),    # w_qkv  (in, out)
        pl.BlockSpec((1, 1, 3 * E), lambda l: (l, 0, 0)),    # b_qkv
        pl.BlockSpec((1, E, E), lambda l: (l, 0, 0)),        # w_out  (in, out)
        pl.BlockSpec((1, 1, E), lambda l: (l, 0, 0)),        # b_out
        pl.BlockSpec((1, 1, E), lambda l: (l, 0, 0)),        # ln1 weight
        pl.BlockSpec((1, 1, E), lambda l: (l, 0, 0)),        # ln1 bias
        pl.BlockSpec((1, E, H), lambda l: (l, 0, 0)),        # ffn linear1 (in, out)
        pl.BlockSpec((1, 1, H), lambda l: (l, 0, 0)),        # ffn bias1
        pl.BlockSpec((1, H, E), lambda l: (l, 0, 0)),        # ffn linear2 (in, out)
        pl.BlockSpec((1, 1, E), lambda l: (l, 0, 0)),        # ffn bias2
        pl.BlockSpec((1, 1, E), lambda l: (l, 0, 0)),        # ln2 weight
        pl.BlockSpec((1, 1, E), lambda l: (l, 0, 0)),        # ln2 bias
    ]

    flops = int(L * (2 * M * E * 3 * E + 4 * B * S * S * E + 2 * M * E * E + 4 * M * E * H))
    transcendentals = int(L * (B * nheads * S * S + 2 * M))
    weight_elems = 4 * E * E + 2 * E * H + 9 * E + H
    bytes_accessed = int(4 * (3 * M * E + L * weight_elems))

    out = pl.pallas_call(
        kern,
        out_shape=jax.ShapeDtypeStruct((M, E), x.dtype),
        grid_spec=pltpu.PrefetchScalarGridSpec(
            num_scalar_prefetch=0,
            grid=(L,),                                       # sequential layer loop
            in_specs=in_specs,
            out_specs=pl.BlockSpec((M, E), lambda l: (0, 0)),
            scratch_shapes=[pltpu.VMEM((M, E), jnp.float32),   # resident activation
                            pltpu.VMEM((M, E), jnp.float32)],  # assembled head outputs
        ),
        compiler_params=pltpu.CompilerParams(dimension_semantics=("arbitrary",)),
        input_output_aliases={0: 0},                         # in-place residual stream
        cost_estimate=pl.CostEstimate(flops=flops, transcendentals=transcendentals,
                                      bytes_accessed=bytes_accessed),
    )(x, pe_slab, params["w_qkv"], params["b_qkv"], params["w_o"], params["b_o"],
      params["ln1w"], params["ln1b"], params["w1"], params["b1"],
      params["w2"], params["b2"], params["ln2w"], params["ln2b"])

    return out.reshape(B, S, E).transpose(1, 0, 2)           # back to (S, B, E)


# ---------------------------------------------------------------------------
# Parameter construction / reference implementation
# ---------------------------------------------------------------------------
def init_layer_params(key, E, H):
    ks = jax.random.split(key, 12)
    s = 0.1
    return dict(
        w_in=jax.random.normal(ks[0], (3 * E, E), jnp.float32) * s,   # in_proj_weight
        b_in=jax.random.normal(ks[1], (3 * E,), jnp.float32) * s,     # in_proj_bias
        wo=jax.random.normal(ks[2], (E, E), jnp.float32) * s,         # out_proj.weight
        bo=jax.random.normal(ks[3], (E,), jnp.float32) * s,           # out_proj.bias
        w1=jax.random.normal(ks[4], (H, E), jnp.float32) * s,         # linear1.weight
        b1=jax.random.normal(ks[5], (H,), jnp.float32) * s,
        w2=jax.random.normal(ks[6], (E, H), jnp.float32) * s,         # linear2.weight
        b2=jax.random.normal(ks[7], (E,), jnp.float32) * s,
        ln1w=1.0 + 0.1 * jax.random.normal(ks[8], (E,), jnp.float32),
        ln1b=0.1 * jax.random.normal(ks[9], (E,), jnp.float32),
        ln2w=1.0 + 0.1 * jax.random.normal(ks[10], (E,), jnp.float32),
        ln2b=0.1 * jax.random.normal(ks[11], (E,), jnp.float32),
    )


def prep_params_for_pallas(raw_layers, E, H):
    """One-time layout prep: transpose every weight to (in, out), stack over layers."""
    stack = lambda fn: jnp.stack([fn(p) for p in raw_layers])
    return dict(
        w_qkv=stack(lambda p: p["w_in"].T),                  # (L, E, 3E)
        b_qkv=stack(lambda p: p["b_in"].reshape(1, 3 * E)),  # (L, 1, 3E)
        w_o=stack(lambda p: p["wo"].T),                      # (L, E, E)
        b_o=stack(lambda p: p["bo"].reshape(1, E)),
        ln1w=stack(lambda p: p["ln1w"].reshape(1, E)),
        ln1b=stack(lambda p: p["ln1b"].reshape(1, E)),
        w1=stack(lambda p: p["w1"].T),                       # (L, E, H)
        b1=stack(lambda p: p["b1"].reshape(1, H)),
        w2=stack(lambda p: p["w2"].T),                       # (L, H, E)
        b2=stack(lambda p: p["b2"].reshape(1, E)),
        ln2w=stack(lambda p: p["ln2w"].reshape(1, E)),
        ln2b=stack(lambda p: p["ln2b"].reshape(1, E)),
    )


def make_positional_encoding(max_len, E):
    position = jnp.arange(max_len, dtype=jnp.float32)[:, None]
    div_term = jnp.exp(jnp.arange(0, E, 2, dtype=jnp.float32) * (-math.log(10000.0) / E))
    pe = jnp.zeros((max_len, E), jnp.float32)
    pe = pe.at[:, 0::2].set(jnp.sin(position * div_term))
    pe = pe.at[:, 1::2].set(jnp.cos(position * div_term))
    return pe


def _ln_ref(v, w, b):
    mu = jnp.mean(v, axis=-1, keepdims=True)
    var = jnp.mean((v - mu) ** 2, axis=-1, keepdims=True)
    return (v - mu) * jax.lax.rsqrt(var + 1e-5) * w + b


def ref_forward(seq, pe, raw_layers, nheads):
    hp = jax.lax.Precision.HIGHEST
    S, B, E = seq.shape
    x = seq + pe[:S][:, None, :]
    for p in raw_layers:
        hd = E // nheads
        wq, wk, wv = jnp.split(p["w_in"], 3, axis=0)
        bq, bk, bv = jnp.split(p["b_in"], 3)
        q = jnp.einsum("sbe,fe->sbf", x, wq, precision=hp) + bq
        k = jnp.einsum("sbe,fe->sbf", x, wk, precision=hp) + bk
        v = jnp.einsum("sbe,fe->sbf", x, wv, precision=hp) + bv
        split = lambda t: t.reshape(S, B, nheads, hd).transpose(1, 2, 0, 3)
        qh, kh, vh = split(q), split(k), split(v)
        s = jnp.einsum("bhqd,bhkd->bhqk", qh, kh, precision=hp) / math.sqrt(hd)
        a = jax.nn.softmax(s, axis=-1)
        o = jnp.einsum("bhqk,bhkd->bhqd", a, vh, precision=hp)
        o = o.transpose(2, 0, 1, 3).reshape(S, B, E)
        o = jnp.einsum("sbe,fe->sbf", o, p["wo"], precision=hp) + p["bo"]
        y = _ln_ref(x + o, p["ln1w"], p["ln1b"])
        f = jnp.maximum(jnp.einsum("sbe,he->sbh", y, p["w1"], precision=hp) + p["b1"], 0.0)
        f = jnp.einsum("sbh,eh->sbe", f, p["w2"], precision=hp) + p["b2"]
        x = _ln_ref(y + f, p["ln2w"], p["ln2b"])
    return x


# ---------------------------------------------------------------------------
if __name__ == "__main__":
    # Small shapes consistent with the module.
    seq_len, batch = 8, 2
    embedding_dim, hidden_dim, nheads, nlayers = 32, 64, 4, 2

    key = jax.random.PRNGKey(0)
    k_tok, *k_layers = jax.random.split(key, 1 + nlayers)

    # "seq is a onehot encoding of the tokens" [seq x batch x word_dim]
    token_ids = jax.random.randint(k_tok, (seq_len, batch), 0, embedding_dim)
    seq = jax.nn.one_hot(token_ids, embedding_dim, dtype=jnp.float32)

    pe = make_positional_encoding(5000, embedding_dim)
    raw_layers = [init_layer_params(k, embedding_dim, hidden_dim) for k in k_layers]
    params = prep_params_for_pallas(raw_layers, embedding_dim, hidden_dim)

    fwd = jax.jit(functools.partial(transformer_encoder_forward, nheads=nheads))
    out = jax.block_until_ready(fwd(seq, pe, params))

    ref = ref_forward(seq, pe, raw_layers, nheads)

    assert out.shape == (seq_len, batch, embedding_dim)
    assert bool(jnp.all(jnp.isfinite(out))), "non-finite values in output"
    assert jnp.allclose(out, ref, atol=5e-3, rtol=5e-3), "mismatch vs reference"
    print("KERNEL_OK")
</pallas_src>

<mosaic_0001>
module attributes {stable_mosaic.version = 11 : i64} {
  func.func @_fused_encoder_kernel(%arg0: i32, %arg1: memref<16x32xf32, #tpu.memory_space<vmem>>, %arg2: memref<16x32xf32, #tpu.memory_space<vmem>>, %arg3: memref<1x32x96xf32, #tpu.memory_space<vmem>>, %arg4: memref<1x1x96xf32, #tpu.memory_space<vmem>>, %arg5: memref<1x32x32xf32, #tpu.memory_space<vmem>>, %arg6: memref<1x1x32xf32, #tpu.memory_space<vmem>>, %arg7: memref<1x1x32xf32, #tpu.memory_space<vmem>>, %arg8: memref<1x1x32xf32, #tpu.memory_space<vmem>>, %arg9: memref<1x32x64xf32, #tpu.memory_space<vmem>>, %arg10: memref<1x1x64xf32, #tpu.memory_space<vmem>>, %arg11: memref<1x64x32xf32, #tpu.memory_space<vmem>>, %arg12: memref<1x1x32xf32, #tpu.memory_space<vmem>>, %arg13: memref<1x1x32xf32, #tpu.memory_space<vmem>>, %arg14: memref<1x1x32xf32, #tpu.memory_space<vmem>>, %arg15: memref<16x32xf32, #tpu.memory_space<vmem>>, %arg16: memref<16x32xf32, #tpu.memory_space<vmem>>, %arg17: memref<16x32xf32, #tpu.memory_space<vmem>>) attributes {dimension_semantics = [#tpu.dimension_semantics<arbitrary>], iteration_bounds = array<i64: 2>, scalar_prefetch = 0 : i64, scratch_operands = 2 : i64, tpu.core_type = #tpu.core_type<tc>, window_params = [{pipeline_mode = #tpu.pipeline_mode<synchronous>, transform_indices = @transform_0, window_bounds = array<i64: 16, 32>}, {pipeline_mode = #tpu.pipeline_mode<synchronous>, transform_indices = @transform_1, window_bounds = array<i64: 16, 32>}, {transform_indices = @transform_2, window_bounds = array<i64: 1, 32, 96>}, {transform_indices = @transform_3, window_bounds = array<i64: 1, 1, 96>}, {transform_indices = @transform_4, window_bounds = array<i64: 1, 32, 32>}, {transform_indices = @transform_5, window_bounds = array<i64: 1, 1, 32>}, {transform_indices = @transform_6, window_bounds = array<i64: 1, 1, 32>}, {transform_indices = @transform_7, window_bounds = array<i64: 1, 1, 32>}, {transform_indices = @transform_8, window_bounds = array<i64: 1, 32, 64>}, {transform_indices = @transform_9, window_bounds = array<i64: 1, 1, 64>}, {transform_indices = @transform_10, window_bounds = array<i64: 1, 64, 32>}, {transform_indices = @transform_11, window_bounds = array<i64: 1, 1, 32>}, {transform_indices = @transform_12, window_bounds = array<i64: 1, 1, 32>}, {transform_indices = @transform_13, window_bounds = array<i64: 1, 1, 32>}, {pipeline_mode = #tpu.pipeline_mode<synchronous>, transform_indices = @transform_14, window_bounds = array<i64: 16, 32>}]} {
    %c0_i32 = arith.constant 0 : i32
    %0 = arith.cmpi eq, %arg0, %c0_i32 : i32
    %1 = arith.extui %0 : i1 to i32
    %c0_i32_0 = arith.constant 0 : i32
    %2 = arith.cmpi ne, %1, %c0_i32_0 : i32
    scf.if %2 {
      %c0_111 = arith.constant 0 : index
      %c0_112 = arith.constant 0 : index
      %226 = vector.load %arg1[%c0_111, %c0_112] : memref<16x32xf32, #tpu.memory_space<vmem>>, vector<16x32xf32>
      %c0_113 = arith.constant 0 : index
      %c0_114 = arith.constant 0 : index
      %227 = vector.load %arg2[%c0_113, %c0_114] : memref<16x32xf32, #tpu.memory_space<vmem>>, vector<16x32xf32>
      %228 = arith.addf %226, %227 : vector<16x32xf32>
      %c0_115 = arith.constant 0 : index
      %c0_116 = arith.constant 0 : index
      %229 = vector.load %arg16[%c0_115, %c0_116] : memref<16x32xf32, #tpu.memory_space<vmem>>, vector<16x32xf32>
      tpu.vector_store %arg16[%c0_115, %c0_116], %228 {strides = array<i32>} : memref<16x32xf32, #tpu.memory_space<vmem>>, vector<16x32xf32>,
    } else {
    }
    %c0 = arith.constant 0 : index
    %c0_1 = arith.constant 0 : index
    %3 = vector.load %arg16[%c0, %c0_1] : memref<16x32xf32, #tpu.memory_space<vmem>>, vector<16x32xf32>
    %c0_2 = arith.constant 0 : index
    %c0_3 = arith.constant 0 : index
    %c0_4 = arith.constant 0 : index
    %4 = vector.load %arg3[%c0_2, %c0_3, %c0_4] : memref<1x32x96xf32, #tpu.memory_space<vmem>>, vector<1x32x96xf32>
    %5 = vector.shape_cast %4 : vector<1x32x96xf32> to vector<32x96xf32>
    %cst = arith.constant dense<0.000000e+00> : vector<16x96xf32>
    %6 = tpu.matmul %3, %5, %cst {dimension_numbers = #tpu.dot_dimension_numbers<[1], [0], [0], [1], [0, 0, 1, 1], [], []>} : vector<16x32xf32>, vector<32x96xf32>, vector<16x96xf32> -> vector<16x96xf32>
    %c0_5 = arith.constant 0 : index
    %c0_6 = arith.constant 0 : index
    %c0_7 = arith.constant 0 : index
    %7 = vector.load %arg4[%c0_5, %c0_6, %c0_7] : memref<1x1x96xf32, #tpu.memory_space<vmem>>, vector<1x1x96xf32>
    %8 = vector.shape_cast %7 : vector<1x1x96xf32> to vector<1x96xf32>
    %9 = vector.broadcast %8 : vector<1x96xf32> to vector<16x96xf32>
    %10 = arith.addf %6, %9 : vector<16x96xf32>
    %11 = vector.extract_strided_slice %10 {offsets = [0, 0], sizes = [16, 32], strides = [1, 1]} : vector<16x96xf32> to vector<16x32xf32>
    %12 = vector.extract_strided_slice %10 {offsets = [0, 32], sizes = [16, 32], strides = [1, 1]} : vector<16x96xf32> to vector<16x32xf32>
    %13 = vector.extract_strided_slice %10 {offsets = [0, 64], sizes = [16, 32], strides = [1, 1]} : vector<16x96xf32> to vector<16x32xf32>
    %14 = vector.extract_strided_slice %11 {offsets = [0, 0], sizes = [8, 8], strides = [1, 1]} : vector<16x32xf32> to vector<8x8xf32>
    %15 = vector.extract_strided_slice %12 {offsets = [0, 0], sizes = [8, 8], strides = [1, 1]} : vector<16x32xf32> to vector<8x8xf32>
    %16 = vector.extract_strided_slice %13 {offsets = [0, 0], sizes = [8, 8], strides = [1, 1]} : vector<16x32xf32> to vector<8x8xf32>
    %cst_8 = arith.constant dense<0.000000e+00> : vector<8x8xf32>
    %17 = tpu.matmul %14, %15, %cst_8 {dimension_numbers = #tpu.dot_dimension_numbers<[1], [1], [0], [0], [0, 0, 1, 0], [], []>} : vector<8x8xf32>, vector<8x8xf32>, vector<8x8xf32> -> vector<8x8xf32>
    %cst_9 = arith.constant 0.353553385 : f32
    %18 = vector.broadcast %cst_9 : f32 to vector<8x8xf32>
    %19 = arith.mulf %17, %18 : vector<8x8xf32>
    %cst_10 = arith.constant dense<0xFF800000> : vector<8xf32>
    %20 = vector.multi_reduction <maximumf>, %19, %cst_10 [1] : vector<8x8xf32> to vector<8xf32>
    %21 = vector.shape_cast %20 : vector<8xf32> to vector<8x1xf32>
    %22 = vector.broadcast %21 : vector<8x1xf32> to vector<8x8xf32>
    %23 = arith.subf %19, %22 : vector<8x8xf32>
    %24 = math.exp %23 : vector<8x8xf32>
    %cst_11 = arith.constant dense<0.000000e+00> : vector<8xf32>
    %25 = vector.multi_reduction <add>, %24, %cst_11 [1] : vector<8x8xf32> to vector<8xf32>
    %26 = vector.shape_cast %25 : vector<8xf32> to vector<8x1xf32>
    %27 = vector.broadcast %26 : vector<8x1xf32> to vector<8x8xf32>
    %28 = arith.divf %24, %27 : vector<8x8xf32>
    %cst_12 = arith.constant dense<0.000000e+00> : vector<8x8xf32>
    %29 = tpu.matmul %28, %16, %cst_12 {dimension_numbers = #tpu.dot_dimension_numbers<[1], [0], [0], [1], [0, 0, 1, 1], [], []>} : vector<8x8xf32>, vector<8x8xf32>, vector<8x8xf32> -> vector<8x8xf32>
    %c0_13 = arith.constant 0 : index
    %c0_14 = arith.constant 0 : index
    %30 = vector.load %arg17[%c0_13, %c0_14] : memref<16x32xf32, #tpu.memory_space<vmem>>, vector<8x8xf32>
    tpu.vector_store %arg17[%c0_13, %c0_14], %29 {strides = array<i32>} : memref<16x32xf32, #tpu.memory_space<vmem>>, vector<8x8xf32>,
    %31 = vector.extract_strided_slice %11 {offsets = [0, 8], sizes = [8, 8], strides = [1, 1]} : vector<16x32xf32> to vector<8x8xf32>
    %32 = vector.extract_strided_slice %12 {offsets = [0, 8], sizes = [8, 8], strides = [1, 1]} : vector<16x32xf32> to vector<8x8xf32>
    %33 = vector.extract_strided_slice %13 {offsets = [0, 8], sizes = [8, 8], strides = [1, 1]} : vector<16x32xf32> to vector<8x8xf32>
    %cst_15 = arith.constant dense<0.000000e+00> : vector<8x8xf32>
    %34 = tpu.matmul %31, %32, %cst_15 {dimension_numbers = #tpu.dot_dimension_numbers<[1], [1], [0], [0], [0, 0, 1, 0], [], []>} : vector<8x8xf32>, vector<8x8xf32>, vector<8x8xf32> -> vector<8x8xf32>
    %cst_16 = arith.constant 0.353553385 : f32
    %35 = vector.broadcast %cst_16 : f32 to vector<8x8xf32>
    %36 = arith.mulf %34, %35 : vector<8x8xf32>
    %cst_17 = arith.constant dense<0xFF800000> : vector<8xf32>
    %37 = vector.multi_reduction <maximumf>, %36, %cst_17 [1] : vector<8x8xf32> to vector<8xf32>
    %38 = vector.shape_cast %37 : vector<8xf32> to vector<8x1xf32>
    %39 = vector.broadcast %38 : vector<8x1xf32> to vector<8x8xf32>
    %40 = arith.subf %36, %39 : vector<8x8xf32>
    %41 = math.exp %40 : vector<8x8xf32>
    %cst_18 = arith.constant dense<0.000000e+00> : vector<8xf32>
    %42 = vector.multi_reduction <add>, %41, %cst_18 [1] : vector<8x8xf32> to vector<8xf32>
    %43 = vector.shape_cast %42 : vector<8xf32> to vector<8x1xf32>
    %44 = vector.broadcast %43 : vector<8x1xf32> to vector<8x8xf32>
    %45 = arith.divf %41, %44 : vector<8x8xf32>
    %cst_19 = arith.constant dense<0.000000e+00> : vector<8x8xf32>
    %46 = tpu.matmul %45, %33, %cst_19 {dimension_numbers = #tpu.dot_dimension_numbers<[1], [0], [0], [1], [0, 0, 1, 1], [], []>} : vector<8x8xf32>, vector<8x8xf32>, vector<8x8xf32> -> vector<8x8xf32>
    %c0_20 = arith.constant 0 : index
    %c8 = arith.constant 8 : index
    %47 = vector.load %arg17[%c0_20, %c8] : memref<16x32xf32, #tpu.memory_space<vmem>>, vector<8x8xf32>
    tpu.vector_store %arg17[%c0_20, %c8], %46 {strides = array<i32>} : memref<16x32xf32, #tpu.memory_space<vmem>>, vector<8x8xf32>,
    %48 = vector.extract_strided_slice %11 {offsets = [0, 16], sizes = [8, 8], strides = [1, 1]} : vector<16x32xf32> to vector<8x8xf32>
    %49 = vector.extract_strided_slice %12 {offsets = [0, 16], sizes = [8, 8], strides = [1, 1]} : vector<16x32xf32> to vector<8x8xf32>
    %50 = vector.extract_strided_slice %13 {offsets = [0, 16], sizes = [8, 8], strides = [1, 1]} : vector<16x32xf32> to vector<8x8xf32>
    %cst_21 = arith.constant dense<0.000000e+00> : vector<8x8xf32>
    %51 = tpu.matmul %48, %49, %cst_21 {dimension_numbers = #tpu.dot_dimension_numbers<[1], [1], [0], [0], [0, 0, 1, 0], [], []>} : vector<8x8xf32>, vector<8x8xf32>, vector<8x8xf32> -> vector<8x8xf32>
    %cst_22 = arith.constant 0.353553385 : f32
    %52 = vector.broadcast %cst_22 : f32 to vector<8x8xf32>
    %53 = arith.mulf %51, %52 : vector<8x8xf32>
    %cst_23 = arith.constant dense<0xFF800000> : vector<8xf32>
    %54 = vector.multi_reduction <maximumf>, %53, %cst_23 [1] : vector<8x8xf32> to vector<8xf32>
    %55 = vector.shape_cast %54 : vector<8xf32> to vector<8x1xf32>
    %56 = vector.broadcast %55 : vector<8x1xf32> to vector<8x8xf32>
    %57 = arith.subf %53, %56 : vector<8x8xf32>
    %58 = math.exp %57 : vector<8x8xf32>
    %cst_24 = arith.constant dense<0.000000e+00> : vector<8xf32>
    %59 = vector.multi_reduction <add>, %58, %cst_24 [1] : vector<8x8xf32> to vector<8xf32>
    %60 = vector.shape_cast %59 : vector<8xf32> to vector<8x1xf32>
    %61 = vector.broadcast %60 : vector<8x1xf32> to vector<8x8xf32>
    %62 = arith.divf %58, %61 : vector<8x8xf32>
    %cst_25 = arith.constant dense<0.000000e+00> : vector<8x8xf32>
    %63 = tpu.matmul %62, %50, %cst_25 {dimension_numbers = #tpu.dot_dimension_numbers<[1], [0], [0], [1], [0, 0, 1, 1], [], []>} : vector<8x8xf32>, vector<8x8xf32>, vector<8x8xf32> -> vector<8x8xf32>
    %c0_26 = arith.constant 0 : index
    %c16 = arith.constant 16 : index
    %64 = vector.load %arg17[%c0_26, %c16] : memref<16x32xf32, #tpu.memory_space<vmem>>, vector<8x8xf32>
    tpu.vector_store %arg17[%c0_26, %c16], %63 {strides = array<i32>} : memref<16x32xf32, #tpu.memory_space<vmem>>, vector<8x8xf32>,
    %65 = vector.extract_strided_slice %11 {offsets = [0, 24], sizes = [8, 8], strides = [1, 1]} : vector<16x32xf32> to vector<8x8xf32>
    %66 = vector.extract_strided_slice %12 {offsets = [0, 24], sizes = [8, 8], strides = [1, 1]} : vector<16x32xf32> to vector<8x8xf32>
    %67 = vector.extract_strided_slice %13 {offsets = [0, 24], sizes = [8, 8], strides = [1, 1]} : vector<16x32xf32> to vector<8x8xf32>
    %cst_27 = arith.constant dense<0.000000e+00> : vector<8x8xf32>
    %68 = tpu.matmul %65, %66, %cst_27 {dimension_numbers = #tpu.dot_dimension_numbers<[1], [1], [0], [0], [0, 0, 1, 0], [], []>} : vector<8x8xf32>, vector<8x8xf32>, vector<8x8xf32> -> vector<8x8xf32>
    %cst_28 = arith.constant 0.353553385 : f32
    %69 = vector.broadcast %cst_28 : f32 to vector<8x8xf32>
    %70 = arith.mulf %68, %69 : vector<8x8xf32>
    %cst_29 = arith.constant dense<0xFF800000> : vector<8xf32>
    %71 = vector.multi_reduction <maximumf>, %70, %cst_29 [1] : vector<8x8xf32> to vector<8xf32>
    %72 = vector.shape_cast %71 : vector<8xf32> to vector<8x1xf32>
    %73 = vector.broadcast %72 : vector<8x1xf32> to vector<8x8xf32>
    %74 = arith.subf %70, %73 : vector<8x8xf32>
    %75 = math.exp %74 : vector<8x8xf32>
    %cst_30 = arith.constant dense<0.000000e+00> : vector<8xf32>
    %76 = vector.multi_reduction <add>, %75, %cst_30 [1] : vector<8x8xf32> to vector<8xf32>
    %77 = vector.shape_cast %76 : vector<8xf32> to vector<8x1xf32>
    %78 = vector.broadcast %77 : vector<8x1xf32> to vector<8x8xf32>
    %79 = arith.divf %75, %78 : vector<8x8xf32>
    %cst_31 = arith.constant dense<0.000000e+00> : vector<8x8xf32>
    %80 = tpu.matmul %79, %67, %cst_31 {dimension_numbers = #tpu.dot_dimension_numbers<[1], [0], [0], [1], [0, 0, 1, 1], [], []>} : vector<8x8xf32>, vector<8x8xf32>, vector<8x8xf32> -> vector<8x8xf32>
    %c0_32 = arith.constant 0 : index
    %c24 = arith.constant 24 : index
    %81 = vector.load %arg17[%c0_32, %c24] : memref<16x32xf32, #tpu.memory_space<vmem>>, vector<8x8xf32>
    tpu.vector_store %arg17[%c0_32, %c24], %80 {strides = array<i32>} : memref<16x32xf32, #tpu.memory_space<vmem>>, vector<8x8xf32>,
    %82 = vector.extract_strided_slice %11 {offsets = [8, 0], sizes = [8, 8], strides = [1, 1]} : vector<16x32xf32> to vector<8x8xf32>
    %83 = vector.extract_strided_slice %12 {offsets = [8, 0], sizes = [8, 8], strides = [1, 1]} : vector<16x32xf32> to vector<8x8xf32>
    %84 = vector.extract_strided_slice %13 {offsets = [8, 0], sizes = [8, 8], strides = [1, 1]} : vector<16x32xf32> to vector<8x8xf32>
    %cst_33 = arith.constant dense<0.000000e+00> : vector<8x8xf32>
    %85 = tpu.matmul %82, %83, %cst_33 {dimension_numbers = #tpu.dot_dimension_numbers<[1], [1], [0], [0], [0, 0, 1, 0], [], []>} : vector<8x8xf32>, vector<8x8xf32>, vector<8x8xf32> -> vector<8x8xf32>
    %cst_34 = arith.constant 0.353553385 : f32
    %86 = vector.broadcast %cst_34 : f32 to vector<8x8xf32>
    %87 = arith.mulf %85, %86 : vector<8x8xf32>
    %cst_35 = arith.constant dense<0xFF800000> : vector<8xf32>
    %88 = vector.multi_reduction <maximumf>, %87, %cst_35 [1] : vector<8x8xf32> to vector<8xf32>
    %89 = vector.shape_cast %88 : vector<8xf32> to vector<8x1xf32>
    %90 = vector.broadcast %89 : vector<8x1xf32> to vector<8x8xf32>
    %91 = arith.subf %87, %90 : vector<8x8xf32>
    %92 = math.exp %91 : vector<8x8xf32>
    %cst_36 = arith.constant dense<0.000000e+00> : vector<8xf32>
    %93 = vector.multi_reduction <add>, %92, %cst_36 [1] : vector<8x8xf32> to vector<8xf32>
    %94 = vector.shape_cast %93 : vector<8xf32> to vector<8x1xf32>
    %95 = vector.broadcast %94 : vector<8x1xf32> to vector<8x8xf32>
    %96 = arith.divf %92, %95 : vector<8x8xf32>
    %cst_37 = arith.constant dense<0.000000e+00> : vector<8x8xf32>
    %97 = tpu.matmul %96, %84, %cst_37 {dimension_numbers = #tpu.dot_dimension_numbers<[1], [0], [0], [1], [0, 0, 1, 1], [], []>} : vector<8x8xf32>, vector<8x8xf32>, vector<8x8xf32> -> vector<8x8xf32>
    %c8_38 = arith.constant 8 : index
    %c0_39 = arith.constant 0 : index
    %98 = vector.load %arg17[%c8_38, %c0_39] : memref<16x32xf32, #tpu.memory_space<vmem>>, vector<8x8xf32>
    tpu.vector_store %arg17[%c8_38, %c0_39], %97 {strides = array<i32>} : memref<16x32xf32, #tpu.memory_space<vmem>>, vector<8x8xf32>,
    %99 = vector.extract_strided_slice %11 {offsets = [8, 8], sizes = [8, 8], strides = [1, 1]} : vector<16x32xf32> to vector<8x8xf32>
    %100 = vector.extract_strided_slice %12 {offsets = [8, 8], sizes = [8, 8], strides = [1, 1]} : vector<16x32xf32> to vector<8x8xf32>
    %101 = vector.extract_strided_slice %13 {offsets = [8, 8], sizes = [8, 8], strides = [1, 1]} : vector<16x32xf32> to vector<8x8xf32>
    %cst_40 = arith.constant dense<0.000000e+00> : vector<8x8xf32>
    %102 = tpu.matmul %99, %100, %cst_40 {dimension_numbers = #tpu.dot_dimension_numbers<[1], [1], [0], [0], [0, 0, 1, 0], [], []>} : vector<8x8xf32>, vector<8x8xf32>, vector<8x8xf32> -> vector<8x8xf32>
    %cst_41 = arith.constant 0.353553385 : f32
    %103 = vector.broadcast %cst_41 : f32 to vector<8x8xf32>
    %104 = arith.mulf %102, %103 : vector<8x8xf32>
    %cst_42 = arith.constant dense<0xFF800000> : vector<8xf32>
    %105 = vector.multi_reduction <maximumf>, %104, %cst_42 [1] : vector<8x8xf32> to vector<8xf32>
    %106 = vector.shape_cast %105 : vector<8xf32> to vector<8x1xf32>
    %107 = vector.broadcast %106 : vector<8x1xf32> to vector<8x8xf32>
    %108 = arith.subf %104, %107 : vector<8x8xf32>
    %109 = math.exp %108 : vector<8x8xf32>
    %cst_43 = arith.constant dense<0.000000e+00> : vector<8xf32>
    %110 = vector.multi_reduction <add>, %109, %cst_43 [1] : vector<8x8xf32> to vector<8xf32>
    %111 = vector.shape_cast %110 : vector<8xf32> to vector<8x1xf32>
    %112 = vector.broadcast %111 : vector<8x1xf32> to vector<8x8xf32>
    %113 = arith.divf %109, %112 : vector<8x8xf32>
    %cst_44 = arith.constant dense<0.000000e+00> : vector<8x8xf32>
    %114 = tpu.matmul %113, %101, %cst_44 {dimension_numbers = #tpu.dot_dimension_numbers<[1], [0], [0], [1], [0, 0, 1, 1], [], []>} : vector<8x8xf32>, vector<8x8xf32>, vector<8x8xf32> -> vector<8x8xf32>
    %c8_45 = arith.constant 8 : index
    %c8_46 = arith.constant 8 : index
    %115 = vector.load %arg17[%c8_45, %c8_46] : memref<16x32xf32, #tpu.memory_space<vmem>>, vector<8x8xf32>
    tpu.vector_store %arg17[%c8_45, %c8_46], %114 {strides = array<i32>} : memref<16x32xf32, #tpu.memory_space<vmem>>, vector<8x8xf32>,
    %116 = vector.extract_strided_slice %11 {offsets = [8, 16], sizes = [8, 8], strides = [1, 1]} : vector<16x32xf32> to vector<8x8xf32>
    %117 = vector.extract_strided_slice %12 {offsets = [8, 16], sizes = [8, 8], strides = [1, 1]} : vector<16x32xf32> to vector<8x8xf32>
    %118 = vector.extract_strided_slice %13 {offsets = [8, 16], sizes = [8, 8], strides = [1, 1]} : vector<16x32xf32> to vector<8x8xf32>
    %cst_47 = arith.constant dense<0.000000e+00> : vector<8x8xf32>
    %119 = tpu.matmul %116, %117, %cst_47 {dimension_numbers = #tpu.dot_dimension_numbers<[1], [1], [0], [0], [0, 0, 1, 0], [], []>} : vector<8x8xf32>, vector<8x8xf32>, vector<8x8xf32> -> vector<8x8xf32>
    %cst_48 = arith.constant 0.353553385 : f32
    %120 = vector.broadcast %cst_48 : f32 to vector<8x8xf32>
    %121 = arith.mulf %119, %120 : vector<8x8xf32>
    %cst_49 = arith.constant dense<0xFF800000> : vector<8xf32>
    %122 = vector.multi_reduction <maximumf>, %121, %cst_49 [1] : vector<8x8xf32> to vector<8xf32>
    %123 = vector.shape_cast %122 : vector<8xf32> to vector<8x1xf32>
    %124 = vector.broadcast %123 : vector<8x1xf32> to vector<8x8xf32>
    %125 = arith.subf %121, %124 : vector<8x8xf32>
    %126 = math.exp %125 : vector<8x8xf32>
    %cst_50 = arith.constant dense<0.000000e+00> : vector<8xf32>
    %127 = vector.multi_reduction <add>, %126, %cst_50 [1] : vector<8x8xf32> to vector<8xf32>
    %128 = vector.shape_cast %127 : vector<8xf32> to vector<8x1xf32>
    %129 = vector.broadcast %128 : vector<8x1xf32> to vector<8x8xf32>
    %130 = arith.divf %126, %129 : vector<8x8xf32>
    %cst_51 = arith.constant dense<0.000000e+00> : vector<8x8xf32>
    %131 = tpu.matmul %130, %118, %cst_51 {dimension_numbers = #tpu.dot_dimension_numbers<[1], [0], [0], [1], [0, 0, 1, 1], [], []>} : vector<8x8xf32>, vector<8x8xf32>, vector<8x8xf32> -> vector<8x8xf32>
    %c8_52 = arith.constant 8 : index
    %c16_53 = arith.constant 16 : index
    %132 = vector.load %arg17[%c8_52, %c16_53] : memref<16x32xf32, #tpu.memory_space<vmem>>, vector<8x8xf32>
    tpu.vector_store %arg17[%c8_52, %c16_53], %131 {strides = array<i32>} : memref<16x32xf32, #tpu.memory_space<vmem>>, vector<8x8xf32>,
    %133 = vector.extract_strided_slice %11 {offsets = [8, 24], sizes = [8, 8], strides = [1, 1]} : vector<16x32xf32> to vector<8x8xf32>
    %134 = vector.extract_strided_slice %12 {offsets = [8, 24], sizes = [8, 8], strides = [1, 1]} : vector<16x32xf32> to vector<8x8xf32>
    %135 = vector.extract_strided_slice %13 {offsets = [8, 24], sizes = [8, 8], strides = [1, 1]} : vector<16x32xf32> to vector<8x8xf32>
    %cst_54 = arith.constant dense<0.000000e+00> : vector<8x8xf32>
    %136 = tpu.matmul %133, %134, %cst_54 {dimension_numbers = #tpu.dot_dimension_numbers<[1], [1], [0], [0], [0, 0, 1, 0], [], []>} : vector<8x8xf32>, vector<8x8xf32>, vector<8x8xf32> -> vector<8x8xf32>
    %cst_55 = arith.constant 0.353553385 : f32
    %137 = vector.broadcast %cst_55 : f32 to vector<8x8xf32>
    %138 = arith.mulf %136, %137 : vector<8x8xf32>
    %cst_56 = arith.constant dense<0xFF800000> : vector<8xf32>
    %139 = vector.multi_reduction <maximumf>, %138, %cst_56 [1] : vector<8x8xf32> to vector<8xf32>
    %140 = vector.shape_cast %139 : vector<8xf32> to vector<8x1xf32>
    %141 = vector.broadcast %140 : vector<8x1xf32> to vector<8x8xf32>
    %142 = arith.subf %138, %141 : vector<8x8xf32>
    %143 = math.exp %142 : vector<8x8xf32>
    %cst_57 = arith.constant dense<0.000000e+00> : vector<8xf32>
    %144 = vector.multi_reduction <add>, %143, %cst_57 [1] : vector<8x8xf32> to vector<8xf32>
    %145 = vector.shape_cast %144 : vector<8xf32> to vector<8x1xf32>
    %146 = vector.broadcast %145 : vector<8x1xf32> to vector<8x8xf32>
    %147 = arith.divf %143, %146 : vector<8x8xf32>
    %cst_58 = arith.constant dense<0.000000e+00> : vector<8x8xf32>
    %148 = tpu.matmul %147, %135, %cst_58 {dimension_numbers = #tpu.dot_dimension_numbers<[1], [0], [0], [1], [0, 0, 1, 1], [], []>} : vector<8x8xf32>, vector<8x8xf32>, vector<8x8xf32> -> vector<8x8xf32>
    %c8_59 = arith.constant 8 : index
    %c24_60 = arith.constant 24 : index
    %149 = vector.load %arg17[%c8_59, %c24_60] : memref<16x32xf32, #tpu.memory_space<vmem>>, vector<8x8xf32>
    tpu.vector_store %arg17[%c8_59, %c24_60], %148 {strides = array<i32>} : memref<16x32xf32, #tpu.memory_space<vmem>>, vector<8x8xf32>,
    %c0_61 = arith.constant 0 : index
    %c0_62 = arith.constant 0 : index
    %150 = vector.load %arg17[%c0_61, %c0_62] : memref<16x32xf32, #tpu.memory_space<vmem>>, vector<16x32xf32>
    %c0_63 = arith.constant 0 : index
    %c0_64 = arith.constant 0 : index
    %c0_65 = arith.constant 0 : index
    %151 = vector.load %arg5[%c0_63, %c0_64, %c0_65] : memref<1x32x32xf32, #tpu.memory_space<vmem>>, vector<1x32x32xf32>
    %152 = vector.shape_cast %151 : vector<1x32x32xf32> to vector<32x32xf32>
    %cst_66 = arith.constant dense<0.000000e+00> : vector<16x32xf32>
    %153 = tpu.matmul %150, %152, %cst_66 {dimension_numbers = #tpu.dot_dimension_numbers<[1], [0], [0], [1], [0, 0, 1, 1], [], []>} : vector<16x32xf32>, vector<32x32xf32>, vector<16x32xf32> -> vector<16x32xf32>
    %c0_67 = arith.constant 0 : index
    %c0_68 = arith.constant 0 : index
    %c0_69 = arith.constant 0 : index
    %154 = vector.load %arg6[%c0_67, %c0_68, %c0_69] : memref<1x1x32xf32, #tpu.memory_space<vmem>>, vector<1x1x32xf32>
    %155 = vector.shape_cast %154 : vector<1x1x32xf32> to vector<1x32xf32>
    %156 = vector.broadcast %155 : vector<1x32xf32> to vector<16x32xf32>
    %157 = arith.addf %153, %156 : vector<16x32xf32>
    %158 = arith.addf %3, %157 : vector<16x32xf32>
    %c0_70 = arith.constant 0 : index
    %c0_71 = arith.constant 0 : index
    %c0_72 = arith.constant 0 : index
    %159 = vector.load %arg7[%c0_70, %c0_71, %c0_72] : memref<1x1x32xf32, #tpu.memory_space<vmem>>, vector<1x1x32xf32>
    %160 = vector.shape_cast %159 : vector<1x1x32xf32> to vector<1x32xf32>
    %c0_73 = arith.constant 0 : index
    %c0_74 = arith.constant 0 : index
    %c0_75 = arith.constant 0 : index
    %161 = vector.load %arg8[%c0_73, %c0_74, %c0_75] : memref<1x1x32xf32, #tpu.memory_space<vmem>>, vector<1x1x32xf32>
    %162 = vector.shape_cast %161 : vector<1x1x32xf32> to vector<1x32xf32>
    %cst_76 = arith.constant dense<0.000000e+00> : vector<16xf32>
    %163 = vector.multi_reduction <add>, %158, %cst_76 [1] : vector<16x32xf32> to vector<16xf32>
    %164 = vector.shape_cast %163 : vector<16xf32> to vector<16x1xf32>
    %cst_77 = arith.constant 3.200000e+01 : f32
    %165 = vector.broadcast %cst_77 : f32 to vector<16x1xf32>
    %166 = arith.divf %164, %165 : vector<16x1xf32>
    %167 = vector.broadcast %166 : vector<16x1xf32> to vector<16x32xf32>
    %168 = arith.subf %158, %167 : vector<16x32xf32>
    %169 = arith.mulf %168, %168 : vector<16x32xf32>
    %cst_78 = arith.constant dense<0.000000e+00> : vector<16xf32>
    %170 = vector.multi_reduction <add>, %169, %cst_78 [1] : vector<16x32xf32> to vector<16xf32>
    %171 = vector.shape_cast %170 : vector<16xf32> to vector<16x1xf32>
    %cst_79 = arith.constant 3.200000e+01 : f32
    %172 = vector.broadcast %cst_79 : f32 to vector<16x1xf32>
    %173 = arith.divf %171, %172 : vector<16x1xf32>
    %cst_80 = arith.constant 9.99999974E-6 : f32
    %174 = vector.broadcast %cst_80 : f32 to vector<16x1xf32>
    %175 = arith.addf %173, %174 : vector<16x1xf32>
    %176 = math.rsqrt %175 : vector<16x1xf32>
    %177 = vector.broadcast %176 : vector<16x1xf32> to vector<16x32xf32>
    %178 = arith.mulf %168, %177 : vector<16x32xf32>
    %179 = vector.broadcast %160 : vector<1x32xf32> to vector<16x32xf32>
    %180 = arith.mulf %178, %179 : vector<16x32xf32>
    %181 = vector.broadcast %162 : vector<1x32xf32> to vector<16x32xf32>
    %182 = arith.addf %180, %181 : vector<16x32xf32>
    %c0_81 = arith.constant 0 : index
    %c0_82 = arith.constant 0 : index
    %c0_83 = arith.constant 0 : index
    %183 = vector.load %arg9[%c0_81, %c0_82, %c0_83] : memref<1x32x64xf32, #tpu.memory_space<vmem>>, vector<1x32x64xf32>
    %184 = vector.shape_cast %183 : vector<1x32x64xf32> to vector<32x64xf32>
    %cst_84 = arith.constant dense<0.000000e+00> : vector<16x64xf32>
    %185 = tpu.matmul %182, %184, %cst_84 {dimension_numbers = #tpu.dot_dimension_numbers<[1], [0], [0], [1], [0, 0, 1, 1], [], []>} : vector<16x32xf32>, vector<32x64xf32>, vector<16x64xf32> -> vector<16x64xf32>
    %c0_85 = arith.constant 0 : index
    %c0_86 = arith.constant 0 : index
    %c0_87 = arith.constant 0 : index
    %186 = vector.load %arg10[%c0_85, %c0_86, %c0_87] : memref<1x1x64xf32, #tpu.memory_space<vmem>>, vector<1x1x64xf32>
    %187 = vector.shape_cast %186 : vector<1x1x64xf32> to vector<1x64xf32>
    %188 = vector.broadcast %187 : vector<1x64xf32> to vector<16x64xf32>
    %189 = arith.addf %185, %188 : vector<16x64xf32>
    %cst_88 = arith.constant 0.000000e+00 : f32
    %190 = vector.broadcast %cst_88 : f32 to vector<16x64xf32>
    %191 = arith.maximumf %189, %190 : vector<16x64xf32>
    %c0_89 = arith.constant 0 : index
    %c0_90 = arith.constant 0 : index
    %c0_91 = arith.constant 0 : index
    %192 = vector.load %arg11[%c0_89, %c0_90, %c0_91] : memref<1x64x32xf32, #tpu.memory_space<vmem>>, vector<1x64x32xf32>
    %193 = vector.shape_cast %192 : vector<1x64x32xf32> to vector<64x32xf32>
    %cst_92 = arith.constant dense<0.000000e+00> : vector<16x32xf32>
    %194 = tpu.matmul %191, %193, %cst_92 {dimension_numbers = #tpu.dot_dimension_numbers<[1], [0], [0], [1], [0, 0, 1, 1], [], []>} : vector<16x64xf32>, vector<64x32xf32>, vector<16x32xf32> -> vector<16x32xf32>
    %c0_93 = arith.constant 0 : index
    %c0_94 = arith.constant 0 : index
    %c0_95 = arith.constant 0 : index
    %195 = vector.load %arg12[%c0_93, %c0_94, %c0_95] : memref<1x1x32xf32, #tpu.memory_space<vmem>>, vector<1x1x32xf32>
    %196 = vector.shape_cast %195 : vector<1x1x32xf32> to vector<1x32xf32>
    %197 = vector.broadcast %196 : vector<1x32xf32> to vector<16x32xf32>
    %198 = arith.addf %194, %197 : vector<16x32xf32>
    %199 = arith.addf %182, %198 : vector<16x32xf32>
    %c0_96 = arith.constant 0 : index
    %c0_97 = arith.constant 0 : index
    %c0_98 = arith.constant 0 : index
    %200 = vector.load %arg13[%c0_96, %c0_97, %c0_98] : memref<1x1x32xf32, #tpu.memory_space<vmem>>, vector<1x1x32xf32>
    %201 = vector.shape_cast %200 : vector<1x1x32xf32> to vector<1x32xf32>
    %c0_99 = arith.constant 0 : index
    %c0_100 = arith.constant 0 : index
    %c0_101 = arith.constant 0 : index
    %202 = vector.load %arg14[%c0_99, %c0_100, %c0_101] : memref<1x1x32xf32, #tpu.memory_space<vmem>>, vector<1x1x32xf32>
    %203 = vector.shape_cast %202 : vector<1x1x32xf32> to vector<1x32xf32>
    %cst_102 = arith.constant dense<0.000000e+00> : vector<16xf32>
    %204 = vector.multi_reduction <add>, %199, %cst_102 [1] : vector<16x32xf32> to vector<16xf32>
    %205 = vector.shape_cast %204 : vector<16xf32> to vector<16x1xf32>
    %cst_103 = arith.constant 3.200000e+01 : f32
    %206 = vector.broadcast %cst_103 : f32 to vector<16x1xf32>
    %207 = arith.divf %205, %206 : vector<16x1xf32>
    %208 = vector.broadcast %207 : vector<16x1xf32> to vector<16x32xf32>
    %209 = arith.subf %199, %208 : vector<16x32xf32>
    %210 = arith.mulf %209, %209 : vector<16x32xf32>
    %cst_104 = arith.constant dense<0.000000e+00> : vector<16xf32>
    %211 = vector.multi_reduction <add>, %210, %cst_104 [1] : vector<16x32xf32> to vector<16xf32>
    %212 = vector.shape_cast %211 : vector<16xf32> to vector<16x1xf32>
    %cst_105 = arith.constant 3.200000e+01 : f32
    %213 = vector.broadcast %cst_105 : f32 to vector<16x1xf32>
    %214 = arith.divf %212, %213 : vector<16x1xf32>
    %cst_106 = arith.constant 9.99999974E-6 : f32
    %215 = vector.broadcast %cst_106 : f32 to vector<16x1xf32>
    %216 = arith.addf %214, %215 : vector<16x1xf32>
    %217 = math.rsqrt %216 : vector<16x1xf32>
    %218 = vector.broadcast %217 : vector<16x1xf32> to vector<16x32xf32>
    %219 = arith.mulf %209, %218 : vector<16x32xf32>
    %220 = vector.broadcast %201 : vector<1x32xf32> to vector<16x32xf32>
    %221 = arith.mulf %219, %220 : vector<16x32xf32>
    %222 = vector.broadcast %203 : vector<1x32xf32> to vector<16x32xf32>
    %223 = arith.addf %221, %222 : vector<16x32xf32>
    %c0_107 = arith.constant 0 : index
    %c0_108 = arith.constant 0 : index
    %224 = vector.load %arg16[%c0_107, %c0_108] : memref<16x32xf32, #tpu.memory_space<vmem>>, vector<16x32xf32>
    tpu.vector_store %arg16[%c0_107, %c0_108], %223 {strides = array<i32>} : memref<16x32xf32, #tpu.memory_space<vmem>>, vector<16x32xf32>,
    %c0_109 = arith.constant 0 : index
    %c0_110 = arith.constant 0 : index
    %225 = vector.load %arg15[%c0_109, %c0_110] : memref<16x32xf32, #tpu.memory_space<vmem>>, vector<16x32xf32>
    tpu.vector_store %arg15[%c0_109, %c0_110], %223 {strides = array<i32>} : memref<16x32xf32, #tpu.memory_space<vmem>>, vector<16x32xf32>,
    return
  }
  func.func @transform_0(%arg0: i32) -> (i32, i32) {
    %c0_i32 = arith.constant 0 : i32
    %c0_i32_0 = arith.constant 0 : i32
    %c0_i32_1 = arith.constant 0 : i32
    return %c0_i32, %c0_i32_0 : i32, i32
  }
  func.func @transform_1(%arg0: i32) -> (i32, i32) {
    %c0_i32 = arith.constant 0 : i32
    %c0_i32_0 = arith.constant 0 : i32
    %c0_i32_1 = arith.constant 0 : i32
    return %c0_i32, %c0_i32_0 : i32, i32
  }
  func.func @transform_2(%arg0: i32) -> (i32, i32, i32) {
    %c0_i32 = arith.constant 0 : i32
    %c0_i32_0 = arith.constant 0 : i32
    %c0_i32_1 = arith.constant 0 : i32
    return %arg0, %c0_i32, %c0_i32_0 : i32, i32, i32
  }
  func.func @transform_3(%arg0: i32) -> (i32, i32, i32) {
    %c0_i32 = arith.constant 0 : i32
    %c0_i32_0 = arith.constant 0 : i32
    %c0_i32_1 = arith.constant 0 : i32
    return %arg0, %c0_i32, %c0_i32_0 : i32, i32, i32
  }
  func.func @transform_4(%arg0: i32) -> (i32, i32, i32) {
    %c0_i32 = arith.constant 0 : i32
    %c0_i32_0 = arith.constant 0 : i32
    %c0_i32_1 = arith.constant 0 : i32
    return %arg0, %c0_i32, %c0_i32_0 : i32, i32, i32
  }
  func.func @transform_5(%arg0: i32) -> (i32, i32, i32) {
    %c0_i32 = arith.constant 0 : i32
    %c0_i32_0 = arith.constant 0 : i32
    %c0_i32_1 = arith.constant 0 : i32
    return %arg0, %c0_i32, %c0_i32_0 : i32, i32, i32
  }
  func.func @transform_6(%arg0: i32) -> (i32, i32, i32) {
    %c0_i32 = arith.constant 0 : i32
    %c0_i32_0 = arith.constant 0 : i32
    %c0_i32_1 = arith.constant 0 : i32
    return %arg0, %c0_i32, %c0_i32_0 : i32, i32, i32
  }
  func.func @transform_7(%arg0: i32) -> (i32, i32, i32) {
    %c0_i32 = arith.constant 0 : i32
    %c0_i32_0 = arith.constant 0 : i32
    %c0_i32_1 = arith.constant 0 : i32
    return %arg0, %c0_i32, %c0_i32_0 : i32, i32, i32
  }
  func.func @transform_8(%arg0: i32) -> (i32, i32, i32) {
    %c0_i32 = arith.constant 0 : i32
    %c0_i32_0 = arith.constant 0 : i32
    %c0_i32_1 = arith.constant 0 : i32
    return %arg0, %c0_i32, %c0_i32_0 : i32, i32, i32
  }
  func.func @transform_9(%arg0: i32) -> (i32, i32, i32) {
    %c0_i32 = arith.constant 0 : i32
    %c0_i32_0 = arith.constant 0 : i32
    %c0_i32_1 = arith.constant 0 : i32
    return %arg0, %c0_i32, %c0_i32_0 : i32, i32, i32
  }
  func.func @transform_10(%arg0: i32) -> (i32, i32, i32) {
    %c0_i32 = arith.constant 0 : i32
    %c0_i32_0 = arith.constant 0 : i32
    %c0_i32_1 = arith.constant 0 : i32
    return %arg0, %c0_i32, %c0_i32_0 : i32, i32, i32
  }
  func.func @transform_11(%arg0: i32) -> (i32, i32, i32) {
    %c0_i32 = arith.constant 0 : i32
    %c0_i32_0 = arith.constant 0 : i32
    %c0_i32_1 = arith.constant 0 : i32
    return %arg0, %c0_i32, %c0_i32_0 : i32, i32, i32
  }
  func.func @transform_12(%arg0: i32) -> (i32, i32, i32) {
    %c0_i32 = arith.constant 0 : i32
    %c0_i32_0 = arith.constant 0 : i32
    %c0_i32_1 = arith.constant 0 : i32
    return %arg0, %c0_i32, %c0_i32_0 : i32, i32, i32
  }
  func.func @transform_13(%arg0: i32) -> (i32, i32, i32) {
    %c0_i32 = arith.constant 0 : i32
    %c0_i32_0 = arith.constant 0 : i32
    %c0_i32_1 = arith.constant 0 : i32
    return %arg0, %c0_i32, %c0_i32_0 : i32, i32, i32
  }
  func.func @transform_14(%arg0: i32) -> (i32, i32) {
    %c0_i32 = arith.constant 0 : i32
    %c0_i32_0 = arith.constant 0 : i32
    %c0_i32_1 = arith.constant 0 : i32
    return %c0_i32, %c0_i32_0 : i32, i32
  }
}

</mosaic_0001>

<bundles_post_ra>
// kernel: transformer_encoder_forward.1
= control target key start
LH: loop header
LB: loop body
LE: loop exit
PB: predicated region body
PF: predicated region fallthrough
CT: control target
= control target key end

     0   :  { %s3067_s29 = smov 0   ;;  %s3377_s0 = inlined_call_operand.vmem [shape: f32[16,32], index: 0, kind: input, shape index: {}, may-alias: {0,14}]   ;;  %s3378_s1 = inlined_call_operand.vmem [shape: f32[16,32], index: 1, kind: input, shape index: {}]   ;;  %s3379_s2 = inlined_call_operand.vmem [shape: f32[2,32,96], index: 2, kind: input, shape index: {}]   ;;  %s3380_s3 = inlined_call_operand.vmem [shape: f32[2,1,96], index: 3, kind: input, shape index: {}]   ;;  %s3381_s4 = inlined_call_operand.vmem [shape: f32[2,32,32], index: 4, kind: input, shape index: {}]   ;;  %s3382_s5 = inlined_call_operand.vmem [shape: f32[2,1,32], index: 5, kind: input, shape index: {}]   ;;  %s3383_s6 = inlined_call_operand.vmem [shape: f32[2,1,32], index: 6, kind: input, shape index: {}]   ;;  %s3384_s7 = inlined_call_operand.vmem [shape: f32[2,1,32], index: 7, kind: input, shape index: {}]   ;;  %s3385_s8 = inlined_call_operand.vmem [shape: f32[2,32,64], index: 8, kind: input, shape index: {}]   ;;  %s3386_s9 = inlined_call_operand.vmem [shape: f32[2,1,64], index: 9, kind: input, shape index: {}]   ;;  %s3387_s10 = inlined_call_operand.vmem [shape: f32[2,64,32], index: 10, kind: input, shape index: {}]   ;;  %s3388_s11 = inlined_call_operand.vmem [shape: f32[2,1,32], index: 11, kind: input, shape index: {}]   ;;  %s3389_s12 = inlined_call_operand.vmem [shape: f32[2,1,32], index: 12, kind: input, shape index: {}]   ;;  %s3390_s13 = inlined_call_operand.vmem [shape: f32[2,1,32], index: 13, kind: input, shape index: {}]   ;;  %s3391_s14 = inlined_call_operand.vmem [shape: f32[16,32], index: 14, kind: output, shape index: {}, may-alias: {0,14}]  }
   0x1   :  { %3396 = sst [smem:[#allocation5_spill]] %s3377_s0 }
   0x2   :  { %3397 = sst [smem:[#allocation6_spill]] %s3378_s1 }
   0x3   :  { %3398 = sst [smem:[#allocation7_spill]] %s3379_s2 }
   0x4   :  { %3399 = sst [smem:[#allocation8_spill]] %s3381_s4 }
   0x5   :  { %3400 = sst [smem:[#allocation9_spill]] %s3391_s14 }
   0x6 LB: > { %3401 = sst [smem:[#allocation4_spill]] %s2974_s29  ;;  %s2613_s30 = sadd.s32 4294967295, %s2974_s29   ;;  %s2974_s29 = sphi %s3067_s29, %s24_s29  }
   0x7   : > { %p2616_p0 = scmp.ge.s32.totalorder %s2974_s29, 1  ;;  %p501_p1 = scmp.lt.s32.totalorder %s2974_s29, 3 }
   0x9   : > { %p502_p2 = pnand %p2616_p0, %p501_p1 }
   0xa   : > { %p581_p3 = scmp.lt.s32.totalorder (!%p502_p2), %s2613_s30, 1  ;;  %s3402_s2 = sld [smem:[#allocation7_spill]] (!%p502_p2) }
   0xb   : > { %505 = sbr.rel (%p502_p2) target bundleno = 2597 (0xa25), region = 76  ;;  %s3403_s4 = sld [smem:[#allocation8_spill]] (!%p502_p2) }
   0xc   : > { %p2625_p4 = scmp.ne.s32.totalorder (!%p502_p2), %s2613_s30, 0 }
  0x12   : > { %s3075_s15 = scalar_select %p581_p3, %s2613_s30, 1 }
  0x13   : > { %628 = sbr.rel (%p2625_p4) target bundleno = 34 (0x22), region = 80  ;;  %s3405_s27 = sld [smem:[#allocation6_spill]] (!%p2625_p4)  ;;  %vm635_vm0 = vcmask (!%p2625_p4), 261120  }
  0x14   : > { %s2668_s16 = sshll.u32 %s3075_s15, 5  ;;  %s618_s0 = scalar_lea.vmem %s3388_s11, %s3075_s15 }
  0x15   : > { %s585_s22 = scalar_lea.vmem %s3402_s2, %s2668_s16  ;;  %s3088_s25 = scalar_lea.vmem %s3403_s4, %s2668_s16 }
  0x16   : > { %s3105_s21 = scalar_lea.vmem %s3385_s8, %s2668_s16  ;;  %s2671_s4 = sshll.u32 %s3075_s15, 6 }
  0x17   : > { %s3115_s28 = scalar_lea.vmem %s3387_s10, %s2671_s4  ;;  %s621_s19 = scalar_lea.vmem %s3389_s12, %s3075_s15 }
  0x18   : > { %s624_s1 = scalar_lea.vmem %s3390_s13, %s3075_s15  ;;  %s3404_s2 = sld [smem:[#allocation5_spill]] (!%p2625_p4) }
  0x19   : > { %v631_v1 = vld [vmem:[%s3405_s27] sm:$0xff] (!%p2625_p4)  ;;  %v632_v4 = vld [vmem:[%s3405_s27 + $0x8] sm:$0xff] (!%p2625_p4) }
  0x1e   : > { %v629_v0 = vld [vmem:[%s3404_s2] sm:$0xff]  ;;  %v630_v2 = vld [vmem:[%s3404_s2 + $0x8] sm:$0xff] }
  0x1f   : > { %v633_v3 = vadd.f32 %v631_v1, %v629_v0  ;;  %v634_v5 = vadd.f32 %v632_v4, %v630_v2 }
  0x21   : > { %636 = vst.msk [vmem:[#allocation2] sm:$0xff] %vm635_vm0, %v633_v3  ;;  %637 = vst.msk [vmem:[#allocation2 + $0x8] sm:$0xff] %vm635_vm0, %v634_v5 }
  0x22 PF: > { %v640_v6 = vld [vmem:[%s585_s22] sm:$0xff]  ;;  %v641_v7 = vld [vmem:[%s585_s22 + $0x8] sm:$0xff]  ;;  %v642_v8 = vld [vmem:[%s585_s22 + $0x10] sm:$0xff]  ;;  %vm651_vm1 = vcmask 261120   ;;  %v2976_v14 = vmov 0.0   ;;  %vm2977_vm2 = vmmov 0   ;;  %s3406_s16 = scalar_lea.vmem %s3380_s3, %s3075_s15 }
  0x23   : > { %v2864_v9 = vpack.c.bf16 %v641_v7, %v640_v6  ;;  %v643_v10 = vld [vmem:[%s585_s22 + $0x18] sm:$0xff]  ;;  %2753 = vmatprep.subr.mxu0 %v2976_v14  ;;  %2755 = vmatprep.mubr.msk.f32.mxu0 %vm2977_vm2, %v2976_v14  ;;  %v2626_v15 = vld [vmem:[%s3406_s16] ss:$0 sm:$0xff]  ;;  %s2978_s20 = smov 120   ;;  %s2979_s23 = smov 96   ;;  %vm736_vm3 = vcmask 64512  }
  0x24   : > { %v2868_v12 = vpack.c.bf16 %v643_v10, %v642_v8  ;;  %s2980_s24 = smov 80   ;;  %s2981_s4 = smov 88   ;;  %vm1070_vm4 = vcmask 130112   ;;  %vm1242_vm5 = vcmask 195712   ;;  %vm1414_vm6 = vcmask 261312  }
  0x25   : > { %2865 = vmatprep.subr.bf16.mxu1 %v2864_v9  ;;  %s2982_s26 = smov 72   ;;  %s2983_s14 = smov 112   ;;  %vm2345_vm7 = vcmask 523264  }
  0x26   : > { %2867 = vmatpush3.bf16.msra.mxu1 %v2864_v9  ;;  %s2984_s29 = smov 104   ;;  %s2985_s18 = smov 56  }
  0x27   : > { %2869 = vmatprep.subr.bf16.mxu1 %v2868_v12  ;;  %s2986_s17 = smov 64   ;;  %s2987_s30 = smov 40  }
  0x28   : > { %v3141_v11 = vld [vmem:[#allocation2] sm:$0xff]  ;;  %v3145_v13 = vld [vmem:[#allocation2 + $0x8] sm:$0xff]  ;;  %s2988_s22 = smov 48   ;;  %s2989_s16 = smov 8  }
  0x29   : > { %2740 = vmatprep.mubr.msk.f32.mxu1 %vm651_vm1, %v3141_v11 }
  0x2a   : > { %2871 = vmatpush3.bf16.msra.mxu1 %v2868_v12 }
  0x2b   : > { %2743 = vmatprep.subr.mxu1 %v2976_v14 }
  0x2d   : > { %2741 = vmatmul.mubr.msk.f32.vlgmr.msra.gmra.mrb[0].mxu1 %vm651_vm1, %v3145_v13 }
  0x2e   : > { %2745 = vmatprep.mubr.msk.f32.mxu1 %vm2977_vm2, %v2976_v14 }
 0x100   : > { %v2742_v16 = vpop.f32.mrb[0].mxu1 }
 0x101   : > { %v724_v17 = vpop.f32.mrb[1].mxu1  ;;  %v3168_v19 = vadd.f32 %v2742_v16, %v2626_v15 }
 0x102   : > { %v3160_v18 = vadd.f32 %v2626_v15, %v724_v17 }
 0x104   : > { %900 = vrot.lane.b32.xlu1 %v3160_v18, %s2978_s20  ;;  %734 = vrot.lane.b32.xlu0 %v3160_v18, %s2979_s23 }
 0x108   : > { %1074 = vrot.lane.b32.xlu1 %v3160_v18, %s2980_s24  ;;  %902 = vrot.lane.b32.xlu0 %v3160_v18, %s2981_s4 }
 0x10c   : > { %1246 = vrot.lane.b32.xlu1 %v3160_v18, %s2982_s26  ;;  %1072 = vrot.lane.b32.xlu0 %v3160_v18, %s2983_s14 }
 0x110   : > { %1417 = vrot.lane.b32.xlu1 %v3168_v19, %s2979_s23  ;;  %1244 = vrot.lane.b32.xlu0 %v3160_v18, %s2984_s29  ;;  %s2991_s23 = smov 24  }
 0x114   : > { %1582 = vrot.lane.b32.xlu1 %v3168_v19, %s2978_s20  ;;  %1584 = vrot.lane.b32.xlu0 %v3168_v19, %s2981_s4  ;;  %s2990_s20 = smov 16   ;;  %s3407_s4 = scalar_lea.vmem %s3382_s5, %s3075_s15 }
 0x118   : > { %1753 = vrot.lane.b32.xlu1 %v3168_v19, %s2983_s14  ;;  %1755 = vrot.lane.b32.xlu0 %v3168_v19, %s2980_s24  ;;  %s3408_s14 = scalar_lea.vmem %s3383_s6, %s3075_s15 }
 0x11c   : > { %1924 = vrot.lane.b32.xlu1 %v3168_v19, %s2984_s29  ;;  %1926 = vrot.lane.b32.xlu0 %v3168_v19, %s2982_s26  ;;  %s3411_s26 = sld [smem:[#allocation9_spill]] }
 0x120   : > { %990 = vrot.lane.b32.xlu1 %v3160_v18, %s2985_s18  ;;  %823 = vrot.lane.b32.xlu0 %v3160_v18, %s2986_s17 }
 0x176   : > { %v901_v20 = vpop.permute.xlu1 %900  ;;  %v735_v21 = vpop.permute.xlu0 %734 }
 0x177   : > { %2744 = vmatpush3.xpose.msk.msra.mxu1 %vm736_vm3, %v735_v21 }
 0x178   : > { %2748 = vmatprep.subr.mxu1 %v2976_v14 }
 0x17a   : > { %v1075_v22 = vpop.permute.xlu1 %1074  ;;  %2746 = vmatmul.mubr.msk.f32.vlgmr.msra.gmra.mrb[2].mxu1 %vm736_vm3, %v3160_v18  ;;  %v903_v23 = vpop.permute.xlu0 %902 }
 0x17b   : > { %2754 = vmatpush3.xpose.msk.msra.mxu0 %vm736_vm3, %v903_v23  ;;  %2750 = vmatprep.mubr.msk.f32.mxu1 %vm2977_vm2, %v2976_v14 }
 0x17c   : > { %2763 = vmatprep.subr.mxu0 %v2976_v14 }
 0x17e   : > { %v1247_v24 = vpop.permute.xlu1 %1246  ;;  %2756 = vmatmul.mubr.msk.f32.vlgmr.msra.gmra.mrb[0].mxu0 %vm736_vm3, %v901_v20  ;;  %v1073_v25 = vpop.permute.xlu0 %1072 }
 0x17f   : > { %2764 = vmatpush3.xpose.msk.msra.mxu0 %vm736_vm3, %v1075_v22  ;;  %2765 = vmatprep.mubr.msk.f32.mxu0 %vm2977_vm2, %v2976_v14 }
 0x180   : > { %2773 = vmatprep.subr.mxu0 %v2976_v14 }
 0x182   : > { %2766 = vmatmul.mubr.msk.f32.vlgmr.msra.gmra.mrb[2].mxu0 %vm736_vm3, %v1073_v25  ;;  %v1245_v26 = vpop.permute.xlu0 %1244  ;;  %v1418_v27 = vpop.permute.xlu1 %1417 }
 0x183   : > { %2774 = vmatpush3.xpose.msk.msra.mxu0 %vm736_vm3, %v1247_v24  ;;  %2775 = vmatprep.mubr.msk.f32.mxu0 %vm2977_vm2, %v2976_v14 }
 0x184   : > { %2783 = vmatprep.subr.mxu0 %v2976_v14 }
 0x186   : > { %2776 = vmatmul.mubr.msk.f32.vlgmr.msra.gmra.mrb[4].mxu0 %vm736_vm3, %v1245_v26  ;;  %v1585_v28 = vpop.permute.xlu0 %1584  ;;  %v1583_v29 = vpop.permute.xlu1 %1582 }
 0x187   : > { %2784 = vmatpush3.xpose.msk.msra.mxu0 %vm736_vm3, %v1418_v27  ;;  %2785 = vmatprep.mubr.msk.f32.mxu0 %vm2977_vm2, %v2976_v14 }
 0x188   : > { %2793 = vmatprep.subr.mxu0 %v2976_v14 }
 0x18a   : > { %2786 = vmatmul.mubr.msk.f32.vlgmr.msra.gmra.mrb[6].mxu0 %vm736_vm3, %v3168_v19  ;;  %v1756_v30 = vpop.permute.xlu0 %1755  ;;  %v1754_v32 = vpop.permute.xlu1 %1753 }
 0x18b   : > { %2794 = vmatpush3.xpose.msk.msra.mxu0 %vm736_vm3, %v1585_v28  ;;  %2795 = vmatprep.mubr.msk.f32.mxu0 %vm2977_vm2, %v2976_v14 }
 0x18c   : > { %2803 = vmatprep.subr.mxu0 %v2976_v14 }
 0x18e   : > { %2796 = vmatmul.mubr.msk.f32.vlgmr.msra.gmra.mrb[8].mxu0 %vm736_vm3, %v1583_v29  ;;  %v1927_v31 = vpop.permute.xlu0 %1926  ;;  %v1925_v34 = vpop.permute.xlu1 %1924 }
 0x18f   : > { %2804 = vmatpush3.xpose.msk.msra.mxu0 %vm736_vm3, %v1756_v30  ;;  %2805 = vmatprep.mubr.msk.f32.mxu0 %vm2977_vm2, %v2976_v14 }
 0x190   : > { %2813 = vmatprep.subr.mxu0 %v2976_v14 }
 0x192   : > { %2806 = vmatmul.mubr.msk.f32.vlgmr.msra.gmra.mrb[10].mxu0 %vm736_vm3, %v1754_v32  ;;  %v824_v33 = vpop.permute.xlu0 %823  ;;  %v3234_v3 = vpop.permute.xlu1 %990 }
 0x193   : > { %2749 = vmatpush3.msra.mxu1 %v824_v33  ;;  %2814 = vmatpush3.xpose.msk.msra.mxu0 %vm736_vm3, %v1927_v31 }
 0x194   : > { %2815 = vmatprep.mubr.msk.f32.mxu0 %vm2977_vm2, %v2976_v14  ;;  %2758 = vmatprep.subr.mxu1 %v2976_v14 }
 0x196   : > { %2816 = vmatmul.mubr.msk.f32.vlgmr.msra.gmra.mrb[12].mxu0 %vm736_vm3, %v1925_v34 }
 0x24d   : > { %v807_v35 = vpop.f32.mrb[2].mxu1 }
 0x24e   : > { %v811_v36 = vmul.f32 0.35355338, %v807_v35  ;;  %v2747_v37 = vpop.f32.mrb[3].mxu1 }
 0x250   : > { %v812_v38 = vsel %vm736_vm3, %v811_v36, -inf }
 0x251   : > { %813 = vmax.xlane.f32.xlu0 %v812_v38  ;;  %v974_v39 = vpop.f32.mrb[0].mxu0 }
 0x252   : > { %v978_v40 = vmul.f32 0.35355338, %v974_v39  ;;  %v2757_v41 = vpop.f32.mrb[1].mxu0 }
 0x254   : > { %v979_v42 = vsel %vm736_vm3, %v978_v40, -inf }
 0x255   : > { %980 = vmax.xlane.f32.xlu1 %v979_v42  ;;  %v1146_v43 = vpop.f32.mrb[2].mxu0 }
 0x256   : > { %v1150_v44 = vmul.f32 0.35355338, %v1146_v43  ;;  %v2767_v45 = vpop.f32.mrb[3].mxu0 }
 0x258   : > { %v1151_v46 = vsel %vm736_vm3, %v1150_v44, -inf }
 0x259   : > { %1152 = vmax.xlane.f32.xlu0 %v1151_v46  ;;  %v1318_v47 = vpop.f32.mrb[4].mxu0 }
 0x25a   : > { %v1322_v48 = vmul.f32 0.35355338, %v1318_v47  ;;  %v2777_v49 = vpop.f32.mrb[5].mxu0 }
 0x25c   : > { %v1323_v50 = vsel %vm736_vm3, %v1322_v48, -inf }
 0x25d   : > { %1324 = vmax.xlane.f32.xlu0 %v1323_v50  ;;  %v1489_v51 = vpop.f32.mrb[6].mxu0 }
 0x25e   : > { %v1493_v52 = vmul.f32 0.35355338, %v1489_v51  ;;  %v2787_v53 = vpop.f32.mrb[7].mxu0 }
 0x260   : > { %v1494_v54 = vsel %vm736_vm3, %v1493_v52, -inf }
 0x261   : > { %1495 = vmax.xlane.f32.xlu1 %v1494_v54  ;;  %v1656_v55 = vpop.f32.mrb[8].mxu0 }
 0x262   : > { %v1660_v56 = vmul.f32 0.35355338, %v1656_v55  ;;  %v2797_v57 = vpop.f32.mrb[9].mxu0 }
 0x264   : > { %v1661_v58 = vsel %vm736_vm3, %v1660_v56, -inf }
 0x265   : > { %1662 = vmax.xlane.f32.xlu0 %v1661_v58  ;;  %v1827_v59 = vpop.f32.mrb[10].mxu0 }
 0x266   : > { %v1831_v60 = vmul.f32 0.35355338, %v1827_v59  ;;  %v2807_v61 = vpop.f32.mrb[11].mxu0 }
 0x268   : > { %v1832_v62 = vsel %vm736_vm3, %v1831_v60, -inf }
 0x269   : > { %1833 = vmax.xlane.f32.xlu1 %v1832_v62  ;;  %v1998_v63 = vpop.f32.mrb[12].mxu0 }
 0x26a   : > { %v2002_v0 = vmul.f32 0.35355338, %v1998_v63  ;;  %v2817_v1 = vpop.f32.mrb[13].mxu0 }
 0x26c   : > { %v2003_v2 = vsel %vm736_vm3, %v2002_v0, -inf }
 0x26d   : > { %2004 = vmax.xlane.f32.xlu0 %v2003_v2 }
 0x27a   : > { %1334 = vrot.lane.b32.xlu1 %v3160_v18, %s2987_s30 }
 0x283   : > { %1162 = vrot.lane.b32.xlu0 %v3160_v18, %s2988_s22 }
 0x2de   : > { %v814_v4 = vpop.xlane.xlu0 %813 }
 0x2df   : > { %v815_v5 = vsub.f32 %v811_v36, %v814_v4 }
 0x2e1   : > { %v816_v6 = vmul.f32 1.442695, %v815_v5 }
 0x2e2   : > { %v981_v7 = vpop.xlane.xlu1 %980 }
 0x2e3   : > { %2928 = vpow2.f32 %v816_v6  ;;  %v982_v8 = vsub.f32 %v978_v40, %v981_v7 }
 0x2e5   : > { %v983_v9 = vmul.f32 1.442695, %v982_v8 }
 0x2e6   : > { %v1153_v10 = vpop.xlane.xlu0 %1152 }
 0x2e7   : > { %2930 = vpow2.f32 %v983_v9  ;;  %v1154_v12 = vsub.f32 %v1150_v44, %v1153_v10 }
 0x2e9   : > { %v1155_v15 = vmul.f32 1.442695, %v1154_v12 }
 0x2ea   : > { %v1325_v16 = vpop.xlane.xlu0 %1324 }
 0x2eb   : > { %2932 = vpow2.f32 %v1155_v15  ;;  %v1326_v17 = vsub.f32 %v1322_v48, %v1325_v16 }
 0x2ed   : > { %v2929_v20 = vpop.eup %2928  ;;  %v1327_v21 = vmul.f32 1.442695, %v1326_v17 }
 0x2ee   : > { %v818_v18 = vsel %vm736_vm3, %v2929_v20, 0.0  ;;  %v1496_v28 = vpop.xlane.xlu1 %1495 }
 0x2ef   : > { %2934 = vpow2.f32 %v1327_v21  ;;  %819 = vadd.xlane.f32.xlu1 %v818_v18  ;;  %v1497_v29 = vsub.f32 %v1493_v52, %v1496_v28 }
 0x2f1   : > { %v2931_v22 = vpop.eup %2930  ;;  %v1498_v33 = vmul.f32 1.442695, %v1497_v29  ;;  %v2099_v29 = vld [vmem:[%s3088_s25 + $0x10] sm:$0xff] }
 0x2f2   : > { %v985_v23 = vsel %vm736_vm3, %v2931_v22, 0.0  ;;  %v1663_v30 = vpop.xlane.xlu0 %1662 }
 0x2f3   : > { %986 = vadd.xlane.f32.xlu0 %v985_v23  ;;  %v1664_v32 = vsub.f32 %v1660_v56, %v1663_v30  ;;  %2936 = vpow2.f32 %v1498_v33  ;;  %v2100_v30 = vld [vmem:[%s3088_s25 + $0x18] sm:$0xff] }
 0x2f5   : > { %v2933_v24 = vpop.eup %2932  ;;  %v1665_v36 = vmul.f32 1.442695, %v1664_v32 }
 0x2f6   : > { %v1157_v25 = vsel %vm736_vm3, %v2933_v24, 0.0  ;;  %v1834_v31 = vpop.xlane.xlu1 %1833 }
 0x2f7   : > { %1158 = vadd.xlane.f32.xlu1 %v1157_v25  ;;  %v1835_v34 = vsub.f32 %v1831_v60, %v1834_v31  ;;  %2938 = vpow2.f32 %v1665_v36  ;;  %v2098_v25 = vld [vmem:[%s3088_s25 + $0x8] sm:$0xff]  ;;  %v2876_v31 = vpack.c.bf16 %v2100_v30, %v2099_v29 }
 0x2f9   : > { %v3239_v26 = vpop.eup %2934  ;;  %v1836_v37 = vmul.f32 1.442695, %v1835_v34 }
 0x2fa   : > { %v1329_v27 = vsel %vm736_vm3, %v3239_v26, 0.0  ;;  %v2005_v35 = vpop.xlane.xlu0 %2004  ;;  %v1335_v48 = vpop.permute.xlu1 %1334 }
 0x2fb   : > { %1330 = vadd.xlane.f32.xlu0 %v1329_v27  ;;  %v2006_v38 = vsub.f32 %v2002_v0, %v2005_v35  ;;  %2940 = vpow2.f32 %v1836_v37 }
 0x2fd   : > { %v2007_v39 = vmul.f32 1.442695, %v2006_v38  ;;  %v2937_v40 = vpop.eup %2936 }
 0x2fe   : > { %v1500_v42 = vsel %vm736_vm3, %v2937_v40, 0.0  ;;  %v1163_v49 = vpop.permute.xlu0 %1162 }
 0x2ff   : > { %2942 = vpow2.f32 %v2007_v39 }
 0x301   : > { %v3247_v41 = vpop.eup %2938 }
 0x302   : > { %v1667_v45 = vsel %vm736_vm3, %v3247_v41, 0.0 }
 0x305   : > { %v3250_v43 = vpop.eup %2940 }
 0x306   : > { %v1838_v44 = vsel %vm736_vm3, %v3250_v43, 0.0 }
 0x308   : > { %1672 = vrot.lane.b32.xlu1 %v3168_v19, %s2985_s18 }
 0x309   : > { %v3256_v46 = vpop.eup %2942 }
 0x30a   : > { %v2009_v47 = vsel %vm736_vm3, %v3256_v46, 0.0 }
 0x311   : > { %1505 = vrot.lane.b32.xlu0 %v3168_v19, %s2986_s17  ;;  %s3409_s17 = scalar_lea.vmem %s3384_s7, %s3075_s15 }
 0x32c   : > { %1501 = vadd.xlane.f32.xlu1 %v1500_v42 }
 0x330   : > { %1839 = vadd.xlane.f32.xlu1 %v1838_v44  ;;  %1668 = vadd.xlane.f32.xlu0 %v1667_v45 }
 0x334   : > { %2010 = vadd.xlane.f32.xlu1 %v2009_v47 }
 0x345   : > { %2014 = vrot.lane.b32.xlu1 %v3168_v19, %s2987_s30 }
 0x346   : > { %1843 = vrot.lane.b32.xlu0 %v3168_v19, %s2988_s22 }
 0x37c   : > { %v820_v50 = vpop.xlane.xlu1 %819 }
 0x37d   : > { %2944 = vrcp.f32 %v820_v50 }
 0x380   : > { %v987_v51 = vpop.xlane.xlu0 %986 }
 0x381   : > { %2946 = vrcp.f32 %v987_v51 }
 0x384   : > { %v1159_v52 = vpop.xlane.xlu1 %1158 }
 0x385   : > { %2948 = vrcp.f32 %v1159_v52 }
 0x387   : > { %v2945_v53 = vpop.eup %2944 }
 0x388   : > { %v822_v54 = vmul.f32 %v2945_v53, %v2929_v20  ;;  %v1331_v55 = vpop.xlane.xlu0 %1330  ;;  %v1673_v62 = vpop.permute.xlu1 %1672 }
 0x389   : > { %2950 = vrcp.f32 %v1331_v55 }
 0x38a   : > { %2751 = vmatmul.mubr.msk.f32.vlgmr.msra.gmra.mrb[4].mxu1 %vm736_vm3, %v822_v54 }
 0x38b   : > { %v2947_v56 = vpop.eup %2946  ;;  %2759 = vmatpush3.msra.mxu1 %v3234_v3  ;;  %2760 = vmatprep.mubr.msk.f32.mxu1 %vm2977_vm2, %v2976_v14 }
 0x38c   : > { %v989_v19 = vmul.f32 %v2947_v56, %v2931_v22  ;;  %2768 = vmatprep.subr.mxu1 %v2976_v14  ;;  %v1506_v61 = vpop.permute.xlu0 %1505 }
 0x38e   : > { %2761 = vmatmul.mubr.msk.f32.vlgmr.msra.gmra.mrb[6].mxu1 %vm736_vm3, %v989_v19 }
 0x38f   : > { %v2949_v57 = vpop.eup %2948  ;;  %2769 = vmatpush3.msra.mxu1 %v1163_v49  ;;  %2770 = vmatprep.mubr.msk.f32.mxu1 %vm2977_vm2, %v2976_v14 }
 0x390   : > { %v1161_v58 = vmul.f32 %v2949_v57, %v2933_v24  ;;  %2778 = vmatprep.subr.mxu1 %v2976_v14  ;;  %v2097_v24 = vld [vmem:[%s3088_s25] sm:$0xff] }
 0x391   : > { %v2872_v27 = vpack.c.bf16 %v2098_v25, %v2097_v24  ;;  %v2657_v25 = vld [vmem:[%s3409_s17] ss:$0 sm:$0xff] }
 0x392   : > { %2771 = vmatmul.mubr.msk.f32.vlgmr.msra.gmra.mrb[8].mxu1 %vm736_vm3, %v1161_v58 }
 0x393   : > { %v2951_v59 = vpop.eup %2950  ;;  %2779 = vmatpush3.msra.mxu1 %v1335_v48  ;;  %2780 = vmatprep.mubr.msk.f32.mxu1 %vm2977_vm2, %v2976_v14 }
 0x394   : > { %v1333_v60 = vmul.f32 %v2951_v59, %v3239_v26  ;;  %2788 = vmatprep.subr.mxu1 %v2976_v14  ;;  %2873 = vmatprep.subr.bf16.mxu0 %v2872_v27 }
 0x395   : > { %2875 = vmatpush3.bf16.msra.mxu0 %v2872_v27 }
 0x396   : > { %2781 = vmatmul.mubr.msk.f32.vlgmr.msra.gmra.mrb[10].mxu1 %vm736_vm3, %v1333_v60  ;;  %2877 = vmatprep.subr.bf16.mxu0 %v2876_v31 }
 0x397   : > { %2789 = vmatpush3.msra.mxu1 %v1506_v61  ;;  %2790 = vmatprep.mubr.msk.f32.mxu1 %vm2977_vm2, %v2976_v14 }
 0x398   : > { %2798 = vmatprep.subr.mxu1 %v2976_v14 }
 0x399   : > { %2879 = vmatpush3.bf16.msra.mxu0 %v2876_v31 }
 0x3b9   : > { %v1502_v63 = vpop.xlane.xlu1 %1501 }
 0x3ba   : > { %2952 = vrcp.f32 %v1502_v63  ;;  %v2237_v63 = vld [vmem:[%s3105_s21 + $0x8] sm:$0xff] }
 0x3bd   : > { %v1840_v0 = vpop.xlane.xlu1 %1839  ;;  %v1669_v1 = vpop.xlane.xlu0 %1668 }
 0x3be   : > { %2954 = vrcp.f32 %v1669_v1  ;;  %v2238_v1 = vld [vmem:[%s3105_s21 + $0x10] sm:$0xff] }
 0x3bf   : > { %2956 = vrcp.f32 %v1840_v0 }
 0x3c1   : > { %v2011_v2 = vpop.xlane.xlu1 %2010  ;;  %v1844_v8 = vpop.permute.xlu0 %1843 }
 0x3c2   : > { %2958 = vrcp.f32 %v2011_v2  ;;  %v2239_v2 = vld [vmem:[%s3105_s21 + $0x18] sm:$0xff] }
 0x3c4   : > { %v2953_v3 = vpop.eup %2952 }
 0x3c5   : > { %v1504_v4 = vmul.f32 %v2953_v3, %v2937_v40  ;;  %v2015_v12 = vpop.permute.xlu1 %2014  ;;  %v2884_v3 = vpack.c.bf16 %v2239_v2, %v2238_v1  ;;  %v2664_v1 = vld [vmem:[%s621_s19] ss:$0 sm:$0xff] }
 0x3c7   : > { %2791 = vmatmul.mubr.msk.f32.vlgmr.msra.gmra.mrb[12].mxu1 %vm736_vm3, %v1504_v4  ;;  %v2330_v4 = vld [vmem:[%s3115_s28] sm:$0xff] }
 0x3c8   : > { %2799 = vmatpush3.msra.mxu1 %v1673_v62  ;;  %2800 = vmatprep.mubr.msk.f32.mxu1 %vm2977_vm2, %v2976_v14  ;;  %v2955_v5 = vpop.eup %2954  ;;  %v2236_v62 = vld [vmem:[%s3105_s21] sm:$0xff] }
 0x3c9   : > { %2808 = vmatprep.subr.mxu1 %v2976_v14  ;;  %v1671_v6 = vmul.f32 %v2955_v5, %v3247_v41  ;;  %v2957_v7 = vpop.eup %2956  ;;  %v2880_v0 = vpack.c.bf16 %v2237_v63, %v2236_v62  ;;  %v2331_v5 = vld [vmem:[%s3115_s28 + $0x8] sm:$0xff] }
 0x3ca   : > { %v1842_v9 = vmul.f32 %v2957_v7, %v3250_v43  ;;  %v2888_v7 = vpack.c.bf16 %v2331_v5, %v2330_v4  ;;  %v2665_v4 = vld [vmem:[%s624_s1] ss:$0 sm:$0xff] }
 0x3cb   : > { %2801 = vmatmul.mubr.msk.f32.vlgmr.msra.gmra.mrb[14].mxu1 %vm736_vm3, %v1671_v6  ;;  %v2332_v6 = vld [vmem:[%s3115_s28 + $0x10] sm:$0xff] }
 0x3cc   : > { %2809 = vmatpush3.msra.mxu1 %v1844_v8  ;;  %2810 = vmatprep.mubr.msk.f32.mxu1 %vm2977_vm2, %v2976_v14  ;;  %v2959_v10 = vpop.eup %2958  ;;  %v2333_v8 = vld [vmem:[%s3115_s28 + $0x18] sm:$0xff] }
 0x3cd   : > { %2818 = vmatprep.subr.mxu1 %v2976_v14  ;;  %v2013_v15 = vmul.f32 %v2959_v10, %v3256_v46  ;;  %v2653_v46 = vld [vmem:[%s3407_s4] ss:$0 sm:$0xff]  ;;  %2889 = vmatprep.subr.bf16.mxu0 %v2888_v7 }
 0x3ce   : > { %v2334_v10 = vld [vmem:[%s3115_s28 + $0x20] sm:$0xff] }
 0x3cf   : > { %2811 = vmatmul.mubr.msk.f32.vlgmr.msra.gmra.mrb[16].mxu1 %vm736_vm3, %v1842_v9  ;;  %v2892_v9 = vpack.c.bf16 %v2333_v8, %v2332_v6 }
 0x3d0   : > { %2819 = vmatpush3.msra.mxu1 %v2015_v12  ;;  %2820 = vmatprep.mubr.msk.f32.mxu1 %vm2977_vm2, %v2976_v14  ;;  %v2335_v12 = vld [vmem:[%s3115_s28 + $0x28] sm:$0xff] }
 0x3d1   : > { %2881 = vmatprep.subr.bf16.mxu1 %v2880_v0 }
 0x3d3   : > { %2821 = vmatmul.mubr.msk.f32.vlgmr.msra.gmra.mrb[18].mxu1 %vm736_vm3, %v2013_v15  ;;  %v2896_v15 = vpack.c.bf16 %v2335_v12, %v2334_v10 }
 0x3d4   : > { %2883 = vmatpush3.bf16.msra.mxu1 %v2880_v0 }
 0x3d5   : > { %2885 = vmatprep.subr.bf16.mxu1 %v2884_v3 }
 0x3d8   : > { %2887 = vmatpush3.bf16.msra.mxu1 %v2884_v3 }
 0x45d   : > { %v895_v16 = vpop.f32.mrb[4].mxu1 }
 0x45e   : > { %899 = vst.msk [vmem:[#allocation3] sm:$0xff] %vm736_vm3, %v895_v16  ;;  %v2752_v17 = vpop.f32.mrb[5].mxu1 }
 0x461   : > { %v1062_v20 = vpop.f32.mrb[6].mxu1 }
 0x462   : > { %1067 = vrot.lane.b32.xlu0 %v1062_v20, %s2989_s16  ;;  %v2762_v21 = vpop.f32.mrb[7].mxu1 }
 0x465   : > { %v1234_v18 = vpop.f32.mrb[8].mxu1 }
 0x466   : > { %1239 = vrot.lane.b32.xlu1 %v1234_v18, %s2990_s20  ;;  %v2772_v14 = vpop.f32.mrb[9].mxu1 }
 0x469   : > { %v1406_v22 = vpop.f32.mrb[10].mxu1 }
 0x46a   : > { %1411 = vrot.lane.b32.xlu1 %v1406_v22, %s2991_s23  ;;  %v2782_v23 = vpop.f32.mrb[11].mxu1 }
 0x46b   : > { %v2656_v23 = vld [vmem:[%s3408_s14] ss:$0 sm:$0xff] }
 0x49a   : > { %v1577_v26 = vpop.f32.mrb[12].mxu1 }
 0x49b   : > { %1581 = vst.msk [vmem:[#allocation3 + $0x8] sm:$0xff] %vm736_vm3, %v1577_v26  ;;  %v2792_v28 = vpop.f32.mrb[13].mxu1 }
 0x49e   : > { %v1744_v32 = vpop.f32.mrb[14].mxu1 }
 0x49f   : > { %1749 = vrot.lane.b32.xlu0 %v1744_v32, %s2989_s16  ;;  %v2802_v33 = vpop.f32.mrb[15].mxu1  ;;  %v2336_v32 = vld [vmem:[%s3115_s28 + $0x30] sm:$0xff]  ;;  %s3410_s16 = scalar_lea.vmem %s3386_s9, %s3075_s15 }
 0x4a0   : > { %v2337_v33 = vld [vmem:[%s3115_s28 + $0x38] sm:$0xff] }
 0x4a2   : > { %v1915_v34 = vpop.f32.mrb[16].mxu1 }
 0x4a3   : > { %1920 = vrot.lane.b32.xlu0 %v1915_v34, %s2990_s20  ;;  %v2812_v35 = vpop.f32.mrb[17].mxu1  ;;  %v2900_v34 = vpack.c.bf16 %v2337_v33, %v2336_v32 }
 0x4a4   : > { %v2658_v35 = vld [vmem:[%s3410_s16] ss:$0 sm:$0xff] }
 0x4a6   : > { %v2086_v36 = vpop.f32.mrb[18].mxu1 }
 0x4a7   : > { %2091 = vrot.lane.b32.xlu1 %v2086_v36, %s2991_s23  ;;  %v2822_v37 = vpop.f32.mrb[19].mxu1 }
 0x4d4   : > { %v1068_v38 = vpop.permute.xlu0 %1067 }
 0x4d5   : > { %1071 = vst.msk [vmem:[#allocation3] sm:$0xff] %vm1070_vm4, %v1068_v38 }
 0x4d8   : > { %v1240_v39 = vpop.permute.xlu1 %1239 }
 0x4d9   : > { %1243 = vst.msk [vmem:[#allocation3] sm:$0xff] %vm1242_vm5, %v1240_v39 }
 0x4dc   : > { %v1412_v40 = vpop.permute.xlu1 %1411 }
 0x4dd   : > { %1415 = vst.msk [vmem:[#allocation3] sm:$0xff] %vm1414_vm6, %v1412_v40 }
 0x4e4   : > { %v2095_v41 = vld [vmem:[#allocation3] sm:$0xff] }
 0x4e5   : > { %2831 = vmatprep.mubr.msk.f32.mxu0 %vm651_vm1, %v2095_v41 }
 0x511   : > { %v1750_v42 = vpop.permute.xlu0 %1749 }
 0x512   : > { %1752 = vst.msk [vmem:[#allocation3 + $0x8] sm:$0xff] %vm1070_vm4, %v1750_v42  ;;  %v2661_v42 = vld [vmem:[%s618_s0] ss:$0 sm:$0xff] }
 0x515   : > { %v1921_v43 = vpop.permute.xlu0 %1920 }
 0x516   : > { %1923 = vst.msk [vmem:[#allocation3 + $0x8] sm:$0xff] %vm1242_vm5, %v1921_v43 }
 0x519   : > { %v2092_v44 = vpop.permute.xlu1 %2091 }
 0x51a   : > { %2094 = vst.msk [vmem:[#allocation3 + $0x8] sm:$0xff] %vm1414_vm6, %v2092_v44 }
 0x521   : > { %v2096_v45 = vld [vmem:[#allocation3 + $0x8] sm:$0xff] }
 0x522   : > { %2832 = vmatmul.mubr.msk.f32.vlgmr.msra.gmra.mrb[14].mxu0 %vm651_vm1, %v2096_v45 }
 0x523   : > { %2891 = vmatpush3.bf16.msra.mxu0 %v2888_v7 }
 0x524   : > { %2893 = vmatprep.subr.bf16.mxu0 %v2892_v9 }
 0x527   : > { %2895 = vmatpush3.bf16.msra.mxu0 %v2892_v9 }
 0x528   : > { %2897 = vmatprep.subr.bf16.mxu0 %v2896_v15 }
 0x52b   : > { %2899 = vmatpush3.bf16.msra.mxu0 %v2896_v15 }
 0x52c   : > { %2901 = vmatprep.subr.bf16.mxu0 %v2900_v34 }
 0x52f   : > { %2903 = vmatpush3.bf16.msra.mxu0 %v2900_v34 }
 0x5f5   : > { %v2833_v47 = vpop.f32.mrb[14].mxu0 }
 0x5f6   : > { %v2186_v48 = vadd.f32 %v2833_v47, %v2653_v46  ;;  %v2180_v49 = vpop.f32.mrb[15].mxu0 }
 0x5f7   : > { %v2181_v50 = vadd.f32 %v2653_v46, %v2180_v49 }
 0x5f8   : > { %v2190_v51 = vadd.f32 %v2186_v48, %v3145_v13 }
 0x5f9   : > { %v2189_v52 = vadd.f32 %v2181_v50, %v3141_v11 }
 0x5fa   : > { %v2196_v53 = vsel %vm651_vm1, %v2190_v51, 0.0 }
 0x5fb   : > { %2197 = vadd.xlane.f32.xlu1 %v2196_v53  ;;  %v2193_v54 = vsel %vm651_vm1, %v2189_v52, 0.0 }
 0x5fc   : > { %2194 = vadd.xlane.f32.xlu0 %v2193_v54 }
 0x688   : > { %v2198_v55 = vpop.xlane.xlu1 %2197 }
 0x689   : > { %v2201_v56 = vmul.f32 0.03125, %v2198_v55  ;;  %v2195_v19 = vpop.xlane.xlu0 %2194 }
 0x68a   : > { %v2200_v57 = vmul.f32 0.03125, %v2195_v19 }
 0x68b   : > { %v2203_v58 = vsub.f32 %v2190_v51, %v2201_v56 }
 0x68c   : > { %v2202_v59 = vsub.f32 %v2189_v52, %v2200_v57 }
 0x68d   : > { %v2205_v13 = vmul.f32 %v2203_v58, %v2203_v58 }
 0x68e   : > { %v2204_v60 = vmul.f32 %v2202_v59, %v2202_v59 }
 0x68f   : > { %v2209_v61 = vsel %vm651_vm1, %v2205_v13, 0.0 }
 0x690   : > { %v2206_v11 = vsel %vm651_vm1, %v2204_v60, 0.0 }
 0x691   : > { %2207 = vadd.xlane.f32.xlu0 %v2206_v11 }
 0x695   : > { %2210 = vadd.xlane.f32.xlu0 %v2209_v61 }
 0x71e   : > { %v2208_v16 = vpop.xlane.xlu0 %2207 }
 0x71f   : > { %v2212_v17 = vmul.f32 0.03125, %v2208_v16 }
 0x721   : > { %v2214_v20 = vadd.f32 1e-05, %v2212_v17 }
 0x722   : > { %v2211_v21 = vpop.xlane.xlu0 %2210 }
 0x723   : > { %2960 = vrsqrt.f32 %v2214_v20  ;;  %v2213_v18 = vmul.f32 0.03125, %v2211_v21 }
 0x725   : > { %v2215_v14 = vadd.f32 1e-05, %v2213_v18 }
 0x727   : > { %2962 = vrsqrt.f32 %v2215_v14 }
 0x72d   : > { %v2961_v22 = vpop.eup %2960 }
 0x72e   : > { %v2218_v24 = vmul.f32 %v2961_v22, %v2202_v59 }
 0x730   : > { %v2226_v26 = vmul.f32 %v2656_v23, %v2218_v24 }
 0x731   : > { %v2963_v27 = vpop.eup %2962 }
 0x732   : > { %v2219_v28 = vmul.f32 %v2963_v27, %v2203_v58  ;;  %v2234_v29 = vadd.f32 %v2657_v25, %v2226_v26 }
 0x734   : > { %v2227_v30 = vmul.f32 %v2656_v23, %v2219_v28  ;;  %2842 = vmatprep.mubr.msk.f32.mxu1 %vm651_vm1, %v2234_v29 }
 0x736   : > { %v2235_v31 = vadd.f32 %v2657_v25, %v2227_v30 }
 0x738   : > { %2843 = vmatmul.mubr.msk.f32.vlgmr.msra.gmra.mrb[20].mxu1 %vm651_vm1, %v2235_v31 }
 0x80b   : > { %v2844_v36 = vpop.f32.mrb[20].mxu1 }
 0x80c   : > { %v2325_v37 = vadd.f32 %v2844_v36, %v2658_v35  ;;  %v2319_v38 = vpop.f32.mrb[21].mxu1 }
 0x80d   : > { %v2320_v39 = vadd.f32 %v2658_v35, %v2319_v38 }
 0x80e   : > { %v2329_v41 = vmax.f32 %v2325_v37, 0.0 }
 0x80f   : > { %v2328_v40 = vmax.f32 %v2320_v39, 0.0 }
 0x811   : > { %2861 = vmatprep.mubr.msk.f32.mxu0 %vm2345_vm7, %v2328_v40 }
 0x812   : > { %2862 = vmatmul.mubr.msk.f32.vlgmr.msra.gmra.mrb[16].mxu0 %vm2345_vm7, %v2329_v41 }
 0x8e5   : > { %v2863_v43 = vpop.f32.mrb[16].mxu0 }
 0x8e6   : > { %v2424_v44 = vadd.f32 %v2863_v43, %v2661_v42  ;;  %v2418_v45 = vpop.f32.mrb[17].mxu0 }
 0x8e7   : > { %v2419_v46 = vadd.f32 %v2661_v42, %v2418_v45 }
 0x8e8   : > { %v2428_v47 = vadd.f32 %v2424_v44, %v2235_v31 }
 0x8e9   : > { %v2427_v48 = vadd.f32 %v2419_v46, %v2234_v29 }
 0x8ea   : > { %v2434_v49 = vsel %vm651_vm1, %v2428_v47, 0.0 }
 0x8eb   : > { %2435 = vadd.xlane.f32.xlu0 %v2434_v49  ;;  %v2431_v50 = vsel %vm651_vm1, %v2427_v48, 0.0 }
 0x8ec   : > { %2432 = vadd.xlane.f32.xlu1 %v2431_v50 }
 0x978   : > { %v2436_v51 = vpop.xlane.xlu0 %2435 }
 0x979   : > { %v2438_v52 = vmul.f32 0.03125, %v2436_v51  ;;  %v2433_v53 = vpop.xlane.xlu1 %2432 }
 0x97a   : > { %v2437_v54 = vmul.f32 0.03125, %v2433_v53 }
 0x97b   : > { %v2440_v55 = vsub.f32 %v2428_v47, %v2438_v52 }
 0x97c   : > { %v2439_v56 = vsub.f32 %v2427_v48, %v2437_v54 }
 0x97d   : > { %v2442_v19 = vmul.f32 %v2440_v55, %v2440_v55 }
 0x97e   : > { %v2441_v57 = vmul.f32 %v2439_v56, %v2439_v56 }
 0x97f   : > { %v2446_v58 = vsel %vm651_vm1, %v2442_v19, 0.0 }
 0x980   : > { %2447 = vadd.xlane.f32.xlu0 %v2446_v58  ;;  %v2443_v59 = vsel %vm651_vm1, %v2441_v57, 0.0 }
 0x981   : > { %2444 = vadd.xlane.f32.xlu1 %v2443_v59 }
 0xa0d   : > { %v2448_v60 = vpop.xlane.xlu0 %2447 }
 0xa0e   : > { %v2450_v11 = vmul.f32 0.03125, %v2448_v60  ;;  %v2445_v13 = vpop.xlane.xlu1 %2444 }
 0xa0f   : > { %v2449_v61 = vmul.f32 0.03125, %v2445_v13 }
 0xa10   : > { %v2452_v62 = vadd.f32 1e-05, %v2450_v11 }
 0xa11   : > { %v2451_v63 = vadd.f32 1e-05, %v2449_v61 }
 0xa12   : > { %2964 = vrsqrt.f32 %v2452_v62 }
 0xa13   : > { %2966 = vrsqrt.f32 %v2451_v63 }
 0xa1c   : > { %v2965_v0 = vpop.eup %2964 }
 0xa1d   : > { %v2967_v2 = vpop.eup %2966  ;;  %v2456_v3 = vmul.f32 %v2965_v0, %v2440_v55 }
 0xa1e   : > { %v2455_v5 = vmul.f32 %v2967_v2, %v2439_v56 }
 0xa1f   : > { %v2464_v6 = vmul.f32 %v2664_v1, %v2456_v3 }
 0xa20   : > { %v2463_v7 = vmul.f32 %v2664_v1, %v2455_v5 }
 0xa21   : > { %v2472_v8 = vadd.f32 %v2665_v4, %v2464_v6 }
 0xa22   : > { %v2471_v9 = vadd.f32 %v2665_v4, %v2463_v7 }
 0xa23   : > { %2474 = vst.msk [vmem:[#allocation2 + $0x8] sm:$0xff] %vm651_vm1, %v2472_v8  ;;  %2476 = vst.msk [vmem:[%s3411_s26 + $0x8] sm:$0xff] %vm651_vm1, %v2472_v8 }
 0xa24   : > { %2473 = vst.msk [vmem:[#allocation2] sm:$0xff] %vm651_vm1, %v2471_v9  ;;  %2475 = vst.msk [vmem:[%s3411_s26] sm:$0xff] %vm651_vm1, %v2471_v9 }
 0xa25 PF: > { %s3412_s1 = sld [smem:[#allocation4_spill]] }
 0xa2b   : > { %s24_s29 = sadd.s32 1, %s3412_s1  }
 0xa2c   : > { %p21_p5 = scmp.ge.s32.totalorder %s24_s29, 4  }
 0xa2e   :  { %23 = sbr.rel (!%p21_p5) target bundleno = 6 (0x6), region = 139 }

</bundles_post_ra>
